<compile_context>
chip_gen: v5e
topology: v5e:2x2
jax: 0.10.0
libtpu: 0.0.40
codegen_flags: <defaults>
</compile_context>

<pallas_src>
from functools import partial

import jax
import jax.numpy as jnp
import numpy as np
from jax.experimental import pallas as pl
from jax.experimental.pallas import tpu as pltpu

CONFIG = [(32, 3, 1), (64, 3, 2), ['R', 1], (128, 3, 2), ['R', 2], (256, 3, 2),
          ['R', 8], (512, 3, 2), ['R', 8], (1024, 3, 2), ['R', 4], (512, 1, 1),
          (1024, 3, 1), (512, 1, 1), (1024, 3, 1), (512, 1, 1), (1024, 3, 1),
          'S', (256, 1, 1), 'U', (256, 1, 1), (512, 3, 1), (256, 1, 1),
          (512, 3, 1), (256, 1, 1), (512, 3, 1), 'S', (128, 1, 1), 'U',
          (128, 1, 1), (256, 3, 1), (128, 1, 1), (256, 3, 1), (128, 1, 1),
          (256, 3, 1), 'S']


# ---------------------------------------------------------------------------
# Chip-generation hints (safe defaults if detection fails).
# ---------------------------------------------------------------------------
def _device_kind():
    try:
        return jax.devices()[0].device_kind.lower()
    except Exception:
        return ""


_KIND = _device_kind()
# v4 / v7x have two TensorCores sharing the grid; v5e/v6e have one.
_MULTI_TC = ("v7" in _KIND) or ("v4" in _KIND)
# v5e MXU is 128 lanes wide -> tn=256 only doubles VMEM without MXU benefit.
_PREF_TN = 128 if "v5" in _KIND else 256


def _round_up(n, m):
    return ((n + m - 1) // m) * m


def _pick_divisor(dim, candidates):
    for c in candidates:
        if dim % c == 0:
            return c
    return None


# ---------------------------------------------------------------------------
# Pallas kernels
# ---------------------------------------------------------------------------
def _conv_mm_stats_kernel(a_ref, b_ref, o_ref, sum_ref, sq_ref, acc_ref):
    """bf16 x bf16 -> f32 accumulate over the K grid axis.

    Last K step: write the (possibly channel-unpadded) tile plus the
    per-channel sum / sum-of-squares so BatchNorm statistics never need
    another HBM pass over y.
    """
    @pl.when(pl.program_id(2) == 0)
    def _():
        acc_ref[...] = jnp.zeros_like(acc_ref)

    acc_ref[...] += jnp.dot(a_ref[...], b_ref[...],
                            preferred_element_type=jnp.float32)

    @pl.when(pl.program_id(2) == pl.num_programs(2) - 1)
    def _():
        y = acc_ref[...]
        ow = o_ref.shape[1]
        yo = y if ow == y.shape[1] else y[:, :ow]      # fused channel un-pad
        o_ref[...] = yo.astype(o_ref.dtype)
        s = jnp.sum(y, axis=0, keepdims=True)          # (1, tn)
        q = jnp.sum(y * y, axis=0, keepdims=True)      # (1, tn)
        sum_ref[...] = jnp.broadcast_to(s, sum_ref.shape)
        sq_ref[...] = jnp.broadcast_to(q, sq_ref.shape)


def _conv_mm_bias_kernel(a_ref, b_ref, bias_ref, o_ref, acc_ref):
    """Same matmul, but the conv bias is fused into the last-K epilogue."""
    @pl.when(pl.program_id(2) == 0)
    def _():
        acc_ref[...] = jnp.zeros_like(acc_ref)

    acc_ref[...] += jnp.dot(a_ref[...], b_ref[...],
                            preferred_element_type=jnp.float32)

    @pl.when(pl.program_id(2) == pl.num_programs(2) - 1)
    def _():
        y = acc_ref[...] + bias_ref[...]
        ow = o_ref.shape[1]
        yo = y if ow == y.shape[1] else y[:, :ow]
        o_ref[...] = yo.astype(o_ref.dtype)


def _bn_leaky_kernel(x_ref, scale_ref, shift_ref, o_ref):
    """y = leaky_relu(x * scale + shift, 0.1); f32 math, bf16 in/out."""
    z = x_ref[...].astype(jnp.float32) * scale_ref[...] + shift_ref[...]
    o_ref[...] = jnp.where(z > 0, z, 0.1 * z).astype(o_ref.dtype)


def _bn_leaky_res_kernel(x_ref, scale_ref, shift_ref, res_ref, o_ref):
    """Same as above but with the residual add fused in."""
    z = x_ref[...].astype(jnp.float32) * scale_ref[...] + shift_ref[...]
    z = jnp.where(z > 0, z, 0.1 * z)
    o_ref[...] = (z + res_ref[...].astype(jnp.float32)).astype(o_ref.dtype)


# ---------------------------------------------------------------------------
# Kernel wrappers
# ---------------------------------------------------------------------------
_TK_CANDIDATES = (1024, 768, 512, 384, 256, 128)   # all multiples of 128


def pallas_conv_matmul(a, b, cout, tm, out_dtype, bias=None):
    """(M_pad, K) bf16 @ (K, Np) bf16 with f32 accumulation.

    bias is None -> returns (y[(M_pad, cout)], col_sum, col_sq); stats are
                    replicated over 8 rows per M tile, shape (n_m*8, Np).
    bias given   -> returns y[(M_pad, cout)] with bias fused in the epilogue.
    """
    M_pad, K = a.shape
    K2, Np = b.shape
    assert K == K2 and Np % 128 == 0 and M_pad % tm == 0

    tn = _PREF_TN if Np % _PREF_TN == 0 else 128
    if Np % tn != 0:
        tn = Np
    if cout != Np:
        # Unpadded (lane-masked) channel store needs a single N tile.
        tn = Np
    # tk: a multiple of 128 that divides K, else the full K (small early convs).
    tk = _pick_divisor(K, _TK_CANDIDATES) or K

    n_m, n_n = M_pad // tm, Np // tn
    if _MULTI_TC and n_m == 1 and n_n == 1:
        # Give the second TensorCore an independent block; split M first so
        # the MXU keeps its full lane width, N only if tm is already small.
        if tm >= 256:
            tm //= 2
        elif cout == Np and tn > 128:
            tn //= 2
        n_m, n_n = M_pad // tm, Np // tn
    n_k = K // tk

    if cout == Np:
        o_shape = jax.ShapeDtypeStruct((M_pad, Np), out_dtype)
        o_spec = pl.BlockSpec((tm, tn), lambda i, j, k: (i, j))
    else:
        o_shape = jax.ShapeDtypeStruct((M_pad, cout), out_dtype)
        o_spec = pl.BlockSpec((tm, cout), lambda i, j, k: (i, 0))

    a_spec = pl.BlockSpec((tm, tk), lambda i, j, k: (i, k))
    b_spec = pl.BlockSpec((tk, tn), lambda i, j, k: (k, j))
    params = pltpu.CompilerParams(
        dimension_semantics=("parallel", "parallel", "arbitrary"))

    if bias is None:
        return pl.pallas_call(
            _conv_mm_stats_kernel,
            out_shape=(o_shape,
                       jax.ShapeDtypeStruct((n_m * 8, Np), jnp.float32),
                       jax.ShapeDtypeStruct((n_m * 8, Np), jnp.float32)),
            grid=(n_m, n_n, n_k),
            in_specs=[a_spec, b_spec],
            out_specs=(o_spec,
                       pl.BlockSpec((8, tn), lambda i, j, k: (i, j)),
                       pl.BlockSpec((8, tn), lambda i, j, k: (i, j))),
            scratch_shapes=[pltpu.VMEM((tm, tn), jnp.float32)],
            compiler_params=params,
        )(a, b)

    return pl.pallas_call(
        _conv_mm_bias_kernel,
        out_shape=o_shape,
        grid=(n_m, n_n, n_k),
        in_specs=[a_spec, b_spec,
                  pl.BlockSpec((1, tn), lambda i, j, k: (0, j))],
        out_specs=o_spec,
        scratch_shapes=[pltpu.VMEM((tm, tn), jnp.float32)],
        compiler_params=params,
    )(a, b, bias)


def pallas_bn_leaky(x, scale, shift, residual=None):
    """Per-channel FMA normalize (gamma=1, beta=0) + LeakyReLU(0.1),
    optionally fused with a residual add."""
    M, C = x.shape
    tm = _pick_divisor(M, (512, 256, 128)) or M
    row_spec = pl.BlockSpec((tm, C), lambda i: (i, 0))
    vec_spec = pl.BlockSpec((1, C), lambda i: (0, 0))

    args = [x, scale.reshape(1, -1), shift.reshape(1, -1)]
    in_specs = [row_spec, vec_spec, vec_spec]
    kernel = _bn_leaky_kernel
    if residual is not None:
        args.append(residual)
        in_specs.append(row_spec)
        kernel = _bn_leaky_res_kernel

    return pl.pallas_call(
        kernel,
        out_shape=jax.ShapeDtypeStruct((M, C), x.dtype),
        grid=(M // tm,),
        in_specs=in_specs,
        out_specs=row_spec,
        compiler_params=pltpu.CompilerParams(
            dimension_semantics=("parallel",)),
    )(*args)


# ---------------------------------------------------------------------------
# Glue: im2col, tiling choices, CNNBlock, model construction, forward
# ---------------------------------------------------------------------------
def im2col(x, k, stride, pad):
    """x: (N,H,W,C) -> (N*Ho*Wo, k*k*C), column ordering (kh, kw, C)."""
    N, H, W, C = x.shape
    if k == 1 and stride == 1 and pad == 0:
        return x.reshape(N * H * W, C), H, W
    if pad > 0:
        x = jnp.pad(x, ((0, 0), (pad, pad), (pad, pad), (0, 0)))
    Ho = (H + 2 * pad - k) // stride + 1
    Wo = (W + 2 * pad - k) // stride + 1
    cols = []
    for i in range(k):
        for j in range(k):
            cols.append(x[:, i:i + stride * Ho:stride,
                          j:j + stride * Wo:stride, :])
    patches = jnp.concatenate(cols, axis=-1)  # (N, Ho, Wo, k*k*C)
    return patches.reshape(N * Ho * Wo, k * k * C), Ho, Wo


def _choose_tm(M):
    """Pick an aligned M tile and the padded row count (multiple of the tile)."""
    if M >= 3072:
        tm = 512
        return tm, _round_up(M, tm)
    if M >= 1024:
        tm = 256
        return tm, _round_up(M, tm)
    if M >= 128:
        tm = 128
        return tm, _round_up(M, tm)
    m_pad = _round_up(max(M, 8), 8)
    return m_pad, m_pad


@partial(jax.jit, static_argnames=("k", "stride", "pad", "bn", "cout"))
def cnn_block_apply(x, w2d, bias, residual, k, stride, pad, bn, cout):
    """CNNBlock: conv (Pallas K-tiled bf16 matmul, fused batch stats / bias)
       [+ BatchNorm(train, gamma=1, beta=0, eps=1e-5) + LeakyReLU(0.1)
        [+ fused residual add]]."""
    N = x.shape[0]
    cols, Ho, Wo = im2col(x, k, stride, pad)          # bf16, (M, k*k*Cin)
    M = cols.shape[0]
    tm, M_pad = _choose_tm(M)
    if M_pad != M:
        cols = jnp.pad(cols, ((0, M_pad - M), (0, 0)))   # zero rows: stats-safe
    Np = w2d.shape[1]

    if bn:
        y, col_sum, col_sq = pallas_conv_matmul(cols, w2d, cout, tm,
                                                jnp.bfloat16)
        s = col_sum.reshape(-1, 8, Np)[:, 0, :cout].sum(axis=0)   # f32
        q = col_sq.reshape(-1, 8, Np)[:, 0, :cout].sum(axis=0)    # f32
        mean = s / M
        var = jnp.maximum(q / M - mean * mean, 0.0)   # biased batch variance
        invstd = jax.lax.rsqrt(var + 1e-5)
        scale = invstd                                # gamma = 1
        shift = -mean * invstd                        # beta = 0
        res2d = None
        if residual is not None:
            res2d = residual.reshape(M, cout)
            if M_pad != M:
                res2d = jnp.pad(res2d, ((0, M_pad - M), (0, 0)))
        y = pallas_bn_leaky(y, scale, shift, res2d)   # bf16
    else:
        y = pallas_conv_matmul(cols, w2d, cout, tm, jnp.float32, bias=bias)

    if M_pad != M:
        y = y[:M]
    return y.reshape(N, Ho, Wo, cout)


@jax.jit
def upsample_concat(x, route):
    # nn.Upsample(scale_factor=2, mode='nearest') + torch.cat(dim=1), fused
    # under one jit so only the concatenated tensor is materialized.
    # TODO(synk): fold into the following 1x1 conv's row gather (scalar-
    # prefetched index_map) so the 4x upsampled tensor is never written.
    up = jnp.repeat(jnp.repeat(x, 2, axis=1), 2, axis=2)
    return jnp.concatenate([up, route], axis=-1)


def init_cnn(key, cin, cout, k, stride, pad, bn):
    kw_, kb_ = jax.random.split(key)
    scale = 1.0 / np.sqrt(cin * k * k)
    w = jax.random.normal(kw_, (k, k, cin, cout), jnp.float32) * scale
    cout_pad = _round_up(cout, 128)                   # lane-dense weight tiles
    w2d = jnp.pad(w.reshape(k * k * cin, cout),
                  ((0, 0), (0, cout_pad - cout))).astype(jnp.bfloat16)
    bias = None
    if not bn:
        b = jax.random.normal(kb_, (cout,), jnp.float32) * 0.01
        bias = jnp.pad(b, (0, cout_pad - cout)).reshape(1, cout_pad)
    return {"w2d": w2d, "b": bias, "k": k, "stride": stride,
            "pad": pad, "bn": bn, "cout": cout}


def apply_cnn(x, p, residual=None):
    return cnn_block_apply(x, p["w2d"], p["b"], residual,
                           k=p["k"], stride=p["stride"], pad=p["pad"],
                           bn=p["bn"], cout=p["cout"])


def build_yolov3(key, in_channels=3, num_classes=20):
    layers = []
    cin = in_channels
    counter = [0]

    def nk():
        counter[0] += 1
        return jax.random.fold_in(key, counter[0])

    for module in CONFIG:
        if isinstance(module, tuple):
            cout, k, s = module
            layers.append({"type": "cnn",
                           "p": init_cnn(nk(), cin, cout, k, s,
                                         1 if k == 3 else 0, True)})
            cin = cout
        elif isinstance(module, list):
            nrep = module[1]
            reps = []
            for _ in range(nrep):
                reps.append((init_cnn(nk(), cin, cin // 2, 1, 1, 0, True),
                             init_cnn(nk(), cin // 2, cin, 3, 1, 1, True)))
            layers.append({"type": "res", "reps": reps,
                           "use_residual": True, "num_repeats": nrep})
        elif module == 'S':
            layers.append({"type": "res",
                           "reps": [(init_cnn(nk(), cin, cin // 2, 1, 1, 0, True),
                                     init_cnn(nk(), cin // 2, cin, 3, 1, 1, True))],
                           "use_residual": False, "num_repeats": 1})
            layers.append({"type": "cnn",
                           "p": init_cnn(nk(), cin, cin // 2, 1, 1, 0, True)})
            cin = cin // 2
            layers.append({"type": "scale",
                           "b1": init_cnn(nk(), cin, cin * 2, 3, 1, 1, True),
                           "b2": init_cnn(nk(), cin * 2,
                                          (num_classes + 5) * 3, 1, 1, 0, False)})
        elif module == 'U':
            layers.append({"type": "up"})
            cin = cin * 3
    return layers


def yolov3_forward(layers, x_nchw, num_classes=20):
    x = jnp.transpose(x_nchw, (0, 2, 3, 1)).astype(jnp.bfloat16)  # NCHW->NHWC
    outputs = []
    routes = []
    for layer in layers:
        t = layer["type"]
        if t == "scale":
            y = apply_cnn(x, layer["b1"])
            y = apply_cnn(y, layer["b2"])             # (N, H, W, 3*(nc+5)) f32
            N, H, W, _ = y.shape
            y_nchw = jnp.transpose(y, (0, 3, 1, 2))
            out = y_nchw.reshape(N, 3, num_classes + 5, H, W)
            out = jnp.transpose(out, (0, 1, 3, 4, 2))  # (N,3,H,W,nc+5)
            outputs.append(out)
            continue
        if t == "cnn":
            x = apply_cnn(x, layer["p"])
        elif t == "res":
            for (c1, c2) in layer["reps"]:
                h = apply_cnn(x, c1)
                x = apply_cnn(h, c2,
                              residual=x if layer["use_residual"] else None)
            if layer["num_repeats"] == 8:
                routes.append(x)
        elif t == "up":
            x = upsample_concat(x, routes[-1])
            routes.pop()
    return outputs


if __name__ == "__main__":
    key = jax.random.PRNGKey(0)
    k_params, k_input = jax.random.split(key)

    num_classes = 20
    layers = build_yolov3(k_params, in_channels=3, num_classes=num_classes)

    # Small input: batch=2, 3 channels, 32x32 spatial (divisible by 32).
    x = jax.random.normal(k_input, (2, 3, 32, 32), jnp.float32)

    outs = yolov3_forward(layers, x, num_classes=num_classes)
    outs = [jax.block_until_ready(o) for o in outs]

    expected = [(2, 3, 1, 1, num_classes + 5),
                (2, 3, 2, 2, num_classes + 5),
                (2, 3, 4, 4, num_classes + 5)]
    assert [tuple(o.shape) for o in outs] == expected, \
        [tuple(o.shape) for o in outs]
    assert all(bool(jnp.all(jnp.isfinite(o))) for o in outs)

    print("KERNEL_OK")
</pallas_src>

<mosaic_0001>
module attributes {stable_mosaic.version = 11 : i64} {
  func.func @_conv_mm_stats_kernel(%arg0: i32, %arg1: i32, %arg2: i32, %arg3: memref<256x27xbf16, #tpu.memory_space<vmem>>, %arg4: memref<27x128xbf16, #tpu.memory_space<vmem>>, %arg5: memref<256x32xbf16, #tpu.memory_space<vmem>>, %arg6: memref<8x128xf32, #tpu.memory_space<vmem>>, %arg7: memref<8x128xf32, #tpu.memory_space<vmem>>, %arg8: memref<256x128xf32, #tpu.memory_space<vmem>>) attributes {dimension_semantics = [#tpu.dimension_semantics<parallel>, #tpu.dimension_semantics<parallel>, #tpu.dimension_semantics<arbitrary>], iteration_bounds = array<i64: 8, 1, 1>, scalar_prefetch = 0 : i64, scratch_operands = 1 : i64, tpu.core_type = #tpu.core_type<tc>, window_params = [{transform_indices = @transform_0, window_bounds = array<i64: 256, 27>}, {transform_indices = @transform_1, window_bounds = array<i64: 27, 128>}, {transform_indices = @transform_2, window_bounds = array<i64: 256, 32>}, {transform_indices = @transform_3, window_bounds = array<i64: 8, 128>}, {transform_indices = @transform_4, window_bounds = array<i64: 8, 128>}]} {
    %c0_i32 = arith.constant 0 : i32
    %0 = arith.cmpi eq, %arg2, %c0_i32 : i32
    %1 = arith.extui %0 : i1 to i32
    %c0_i32_0 = arith.constant 0 : i32
    %2 = arith.cmpi ne, %1, %c0_i32_0 : i32
    scf.if %2 {
      %cst_10 = arith.constant 0.000000e+00 : f32
      %12 = vector.broadcast %cst_10 : f32 to vector<256x128xf32>
      %c0_11 = arith.constant 0 : index
      %c0_12 = arith.constant 0 : index
      %13 = vector.load %arg8[%c0_11, %c0_12] : memref<256x128xf32, #tpu.memory_space<vmem>>, vector<256x128xf32>
      tpu.vector_store %arg8[%c0_11, %c0_12], %12 {strides = array<i32>} : memref<256x128xf32, #tpu.memory_space<vmem>>, vector<256x128xf32>,
    } else {
    }
    %c0 = arith.constant 0 : index
    %c0_1 = arith.constant 0 : index
    %3 = vector.load %arg8[%c0, %c0_1] : memref<256x128xf32, #tpu.memory_space<vmem>>, vector<256x128xf32>
    %c0_2 = arith.constant 0 : index
    %c0_3 = arith.constant 0 : index
    %4 = vector.load %arg3[%c0_2, %c0_3] : memref<256x27xbf16, #tpu.memory_space<vmem>>, vector<256x27xbf16>
    %c0_4 = arith.constant 0 : index
    %c0_5 = arith.constant 0 : index
    %5 = vector.load %arg4[%c0_4, %c0_5] : memref<27x128xbf16, #tpu.memory_space<vmem>>, vector<27x128xbf16>
    %cst = arith.constant dense<0.000000e+00> : vector<256x128xf32>
    %6 = tpu.matmul %4, %5, %cst {dimension_numbers = #tpu.dot_dimension_numbers<[1], [0], [0], [1], [0, 0, 1, 1], [], []>} : vector<256x27xbf16>, vector<27x128xbf16>, vector<256x128xf32> -> vector<256x128xf32>
    %7 = arith.addf %3, %6 : vector<256x128xf32>
    %c0_6 = arith.constant 0 : index
    %c0_7 = arith.constant 0 : index
    %8 = vector.load %arg8[%c0_6, %c0_7] : memref<256x128xf32, #tpu.memory_space<vmem>>, vector<256x128xf32>
    tpu.vector_store %arg8[%c0_6, %c0_7], %7 {strides = array<i32>} : memref<256x128xf32, #tpu.memory_space<vmem>>, vector<256x128xf32>,
    %c0_i32_8 = arith.constant 0 : i32
    %9 = arith.cmpi eq, %arg2, %c0_i32_8 : i32
    %10 = arith.extui %9 : i1 to i32
    %c0_i32_9 = arith.constant 0 : i32
    %11 = arith.cmpi ne, %10, %c0_i32_9 : i32
    scf.if %11 {
      %c0_10 = arith.constant 0 : index
      %c0_11 = arith.constant 0 : index
      %12 = vector.load %arg8[%c0_10, %c0_11] : memref<256x128xf32, #tpu.memory_space<vmem>>, vector<256x128xf32>
      %13 = vector.extract_strided_slice %12 {offsets = [0, 0], sizes = [256, 32], strides = [1, 1]} : vector<256x128xf32> to vector<256x32xf32>
      %14 = arith.truncf %13 : vector<256x32xf32> to vector<256x32xbf16>
      %c0_12 = arith.constant 0 : index
      %c0_13 = arith.constant 0 : index
      %15 = vector.load %arg5[%c0_12, %c0_13] : memref<256x32xbf16, #tpu.memory_space<vmem>>, vector<256x32xbf16>
      tpu.vector_store %arg5[%c0_12, %c0_13], %14 {strides = array<i32>} : memref<256x32xbf16, #tpu.memory_space<vmem>>, vector<256x32xbf16>,
      %cst_14 = arith.constant dense<0.000000e+00> : vector<128xf32>
      %16 = vector.multi_reduction <add>, %12, %cst_14 [0] : vector<256x128xf32> to vector<128xf32>
      %17 = vector.shape_cast %16 : vector<128xf32> to vector<1x128xf32>
      %18 = arith.mulf %12, %12 : vector<256x128xf32>
      %cst_15 = arith.constant dense<0.000000e+00> : vector<128xf32>
      %19 = vector.multi_reduction <add>, %18, %cst_15 [0] : vector<256x128xf32> to vector<128xf32>
      %20 = vector.shape_cast %19 : vector<128xf32> to vector<1x128xf32>
      %21 = vector.shape_cast %17 : vector<1x128xf32> to vector<1x128xf32>
      %22 = vector.broadcast %21 : vector<1x128xf32> to vector<8x128xf32>
      %c0_16 = arith.constant 0 : index
      %c0_17 = arith.constant 0 : index
      %23 = vector.load %arg6[%c0_16, %c0_17] : memref<8x128xf32, #tpu.memory_space<vmem>>, vector<8x128xf32>
      tpu.vector_store %arg6[%c0_16, %c0_17], %22 {strides = array<i32>} : memref<8x128xf32, #tpu.memory_space<vmem>>, vector<8x128xf32>,
      %24 = vector.shape_cast %20 : vector<1x128xf32> to vector<1x128xf32>
      %25 = vector.broadcast %24 : vector<1x128xf32> to vector<8x128xf32>
      %c0_18 = arith.constant 0 : index
      %c0_19 = arith.constant 0 : index
      %26 = vector.load %arg7[%c0_18, %c0_19] : memref<8x128xf32, #tpu.memory_space<vmem>>, vector<8x128xf32>
      tpu.vector_store %arg7[%c0_18, %c0_19], %25 {strides = array<i32>} : memref<8x128xf32, #tpu.memory_space<vmem>>, vector<8x128xf32>,
    } else {
    }
    return
  }
  func.func @transform_0(%arg0: i32, %arg1: i32, %arg2: i32) -> (i32, i32) {
    %c0_i32 = arith.constant 0 : i32
    return %arg0, %arg2 : i32, i32
  }
  func.func @transform_1(%arg0: i32, %arg1: i32, %arg2: i32) -> (i32, i32) {
    %c0_i32 = arith.constant 0 : i32
    return %arg2, %arg1 : i32, i32
  }
  func.func @transform_2(%arg0: i32, %arg1: i32, %arg2: i32) -> (i32, i32) {
    %c0_i32 = arith.constant 0 : i32
    %c0_i32_0 = arith.constant 0 : i32
    return %arg0, %c0_i32 : i32, i32
  }
  func.func @transform_3(%arg0: i32, %arg1: i32, %arg2: i32) -> (i32, i32) {
    %c0_i32 = arith.constant 0 : i32
    return %arg0, %arg1 : i32, i32
  }
  func.func @transform_4(%arg0: i32, %arg1: i32, %arg2: i32) -> (i32, i32) {
    %c0_i32 = arith.constant 0 : i32
    return %arg0, %arg1 : i32, i32
  }
}

module attributes {stable_mosaic.version = 11 : i64} {
  func.func @_bn_leaky_kernel(%arg0: i32, %arg1: memref<512x32xbf16, #tpu.memory_space<vmem>>, %arg2: memref<1x32xf32, #tpu.memory_space<vmem>>, %arg3: memref<1x32xf32, #tpu.memory_space<vmem>>, %arg4: memref<512x32xbf16, #tpu.memory_space<vmem>>) attributes {dimension_semantics = [#tpu.dimension_semantics<parallel>], iteration_bounds = array<i64: 4>, scalar_prefetch = 0 : i64, scratch_operands = 0 : i64, tpu.core_type = #tpu.core_type<tc>, window_params = [{transform_indices = @transform_0, window_bounds = array<i64: 512, 32>}, {pipeline_mode = #tpu.pipeline_mode<synchronous>, transform_indices = @transform_1, window_bounds = array<i64: 1, 32>}, {pipeline_mode = #tpu.pipeline_mode<synchronous>, transform_indices = @transform_2, window_bounds = array<i64: 1, 32>}, {transform_indices = @transform_3, window_bounds = array<i64: 512, 32>}]} {
    %c0 = arith.constant 0 : index
    %c0_0 = arith.constant 0 : index
    %0 = vector.load %arg1[%c0, %c0_0] : memref<512x32xbf16, #tpu.memory_space<vmem>>, vector<512x32xbf16>
    %1 = arith.extf %0 : vector<512x32xbf16> to vector<512x32xf32>
    %c0_1 = arith.constant 0 : index
    %c0_2 = arith.constant 0 : index
    %2 = vector.load %arg2[%c0_1, %c0_2] : memref<1x32xf32, #tpu.memory_space<vmem>>, vector<1x32xf32>
    %3 = vector.broadcast %2 : vector<1x32xf32> to vector<512x32xf32>
    %4 = arith.mulf %1, %3 : vector<512x32xf32>
    %c0_3 = arith.constant 0 : index
    %c0_4 = arith.constant 0 : index
    %5 = vector.load %arg3[%c0_3, %c0_4] : memref<1x32xf32, #tpu.memory_space<vmem>>, vector<1x32xf32>
    %6 = vector.broadcast %5 : vector<1x32xf32> to vector<512x32xf32>
    %7 = arith.addf %4, %6 : vector<512x32xf32>
    %cst = arith.constant 0.000000e+00 : f32
    %8 = vector.broadcast %cst : f32 to vector<512x32xf32>
    %9 = arith.cmpf ogt, %7, %8 : vector<512x32xf32>
    %cst_5 = arith.constant 1.000000e-01 : f32
    %10 = vector.broadcast %cst_5 : f32 to vector<512x32xf32>
    %11 = arith.mulf %10, %7 : vector<512x32xf32>
    %12 = arith.select %9, %7, %11 : vector<512x32xi1>, vector<512x32xf32>
    %13 = arith.truncf %12 : vector<512x32xf32> to vector<512x32xbf16>
    %c0_6 = arith.constant 0 : index
    %c0_7 = arith.constant 0 : index
    %14 = vector.load %arg4[%c0_6, %c0_7] : memref<512x32xbf16, #tpu.memory_space<vmem>>, vector<512x32xbf16>
    tpu.vector_store %arg4[%c0_6, %c0_7], %13 {strides = array<i32>} : memref<512x32xbf16, #tpu.memory_space<vmem>>, vector<512x32xbf16>,
    return
  }
  func.func @transform_0(%arg0: i32) -> (i32, i32) {
    %c0_i32 = arith.constant 0 : i32
    %c0_i32_0 = arith.constant 0 : i32
    return %arg0, %c0_i32 : i32, i32
  }
  func.func @transform_1(%arg0: i32) -> (i32, i32) {
    %c0_i32 = arith.constant 0 : i32
    %c0_i32_0 = arith.constant 0 : i32
    %c0_i32_1 = arith.constant 0 : i32
    return %c0_i32, %c0_i32_0 : i32, i32
  }
  func.func @transform_2(%arg0: i32) -> (i32, i32) {
    %c0_i32 = arith.constant 0 : i32
    %c0_i32_0 = arith.constant 0 : i32
    %c0_i32_1 = arith.constant 0 : i32
    return %c0_i32, %c0_i32_0 : i32, i32
  }
  func.func @transform_3(%arg0: i32) -> (i32, i32) {
    %c0_i32 = arith.constant 0 : i32
    %c0_i32_0 = arith.constant 0 : i32
    return %arg0, %c0_i32 : i32, i32
  }
}

</mosaic_0001>

<bundles_post_ra>
// kernel: cnn_block_apply.2
= control target key start
LH: loop header
LB: loop body
LE: loop exit
PB: predicated region body
PF: predicated region fallthrough
CT: control target
= control target key end

     0   :  { %s1286_s15 = smov 0   ;;  %s1288_s16 = smov 0   ;;  %s1600_s0 = inlined_call_operand.vmem [shape: bf16[2048,27], index: 0, kind: input, shape index: {}]   ;;  %s1601_s1 = inlined_call_operand.vmem [shape: bf16[27,128], index: 1, kind: input, shape index: {}]   ;;  %s1602_s2 = inlined_call_operand.vmem [shape: bf16[2048,32], index: 2, kind: output, shape index: {0}]   ;;  %s1603_s3 = inlined_call_operand.vmem [shape: f32[64,128], index: 3, kind: output, shape index: {1}]   ;;  %s1604_s4 = inlined_call_operand.vmem [shape: f32[64,128], index: 4, kind: output, shape index: {2}]  }
   0x1   :  { %s1290_s17 = smov 0  }
   0x2 LB: > { %s34_s18 = sadd.s32 1, %s1254_s16  ;;  %p1090_p0 = scmp.ge.s32.totalorder %s1258_s17, 1  ;;  %s1258_s17 = sphi %s1290_s17, %s15_s17   ;;  %s1254_s16 = sphi %s1288_s16, %s1606_s16   ;;  %s1250_s15 = sphi %s1286_s15, %s1605_s15  }
   0x3   : > { %p36_p1 = scmp.ge.s32.totalorder %s34_s18, 8  ;;  %p212_p2 = scmp.lt.s32.totalorder %s1258_s17, 9 }
   0x5   : > { %s1608_s18 = smov (%p36_p1, %s34_s18), 0  ;;  %p213_p3 = pnand %p1090_p0, %p212_p2 }
   0x6   : > { %s1091_s23 = sshll.u32 (!%p213_p3), %s1250_s15, 5  ;;  %p287_p5 = scmp.lt.s32.totalorder (!%p213_p3), %s1250_s15, 7 }
   0x7   : > { %216 = sbr.rel (%p213_p3) target bundleno = 272 (0x110), region = 28  ;;  %p264_p4 = scmp.lt.s32.totalorder (!%p213_p3), %s1091_s23, 255 }
   0xc   : > { %v1167_v0 = vld [vmem:[%s1601_s1 + $0x8] sm:$0xf]  ;;  %v1204_v1 = vld [vmem:[%s1601_s1 + $0x8] sm:$0x30]  ;;  %vm546_vm0 = vcmask 1044480   ;;  %vm547_vm1 = vcmask 1045504  }
   0xd   : > { %v1168_v2 = vor.u32 %v1204_v1, %v1167_v0  ;;  %v1260_v3 = vmov 65535   ;;  %s1610_s23 = smov (!%p264_p4, %s1091_s23), 255  ;;  %v1203_v7 = vld [vmem:[%s1601_s1] sm:$0xff]  ;;  %vm497_vm2 = vcmask 220160   ;;  %vm773_vm3 = vcmask 257024   ;;  %s1612_s15 = smov (!%p287_p5, %s1250_s15), 7 }
   0xe   : > { %v548_v4 = vsel %vm546_vm0, 4294967295, %v1260_v3  ;;  %s1092_s26 = sshll.u32 %s1610_s23, 2  ;;  %s1095_s7 = sshll.u32 %s1612_s15, 3 }
   0xf   : > { %v549_v5 = vsel %vm547_vm1, %v548_v4, 0  ;;  %s1324_s29 = scalar_lea.vmem %s1600_s0, %s1092_s26  ;;  %s1363_s6 = scalar_lea.vmem %s1602_s2, %s1092_s26 }
  0x10   : > { %v551_v6 = vand.u32 %v1168_v2, %v549_v5  ;;  %v1187_v8 = vld [vmem:[%s1324_s29] sm:$0xff]  ;;  %v1188_v12 = vld [vmem:[%s1324_s29 + $0x8] sm:$0xff]  ;;  %v1189_v16 = vld [vmem:[%s1324_s29 + $0x10] sm:$0xff]  ;;  %s293_s10 = scalar_lea.vmem %s1603_s3, %s1095_s7  ;;  %s300_s13 = scalar_lea.vmem %s1604_s4, %s1095_s7 }
  0x11   : > { %v1191_v9 = vld [vmem:[%s1324_s29 + $0x20] sm:$0xff]  ;;  %v1192_v13 = vld [vmem:[%s1324_s29 + $0x28] sm:$0xff]  ;;  %v1193_v17 = vld [vmem:[%s1324_s29 + $0x30] sm:$0xff] }
  0x12   : > { %559 = vmatpush.bf16.msra.mxu0 %v551_v6  ;;  %1205 = vmatpush.bf16.msra.mxu1 %v551_v6  ;;  %v1195_v10 = vld [vmem:[%s1324_s29 + $0x40] sm:$0xff]  ;;  %v1196_v14 = vld [vmem:[%s1324_s29 + $0x48] sm:$0xff]  ;;  %v1197_v18 = vld [vmem:[%s1324_s29 + $0x50] sm:$0xff] }
  0x13   : > { %1206 = vmatpush.bf16.msra.mxu2 %v551_v6  ;;  %1207 = vmatpush.bf16.msra.mxu3 %v551_v6  ;;  %v1199_v11 = vld [vmem:[%s1324_s29 + $0x60] sm:$0xff]  ;;  %v1200_v15 = vld [vmem:[%s1324_s29 + $0x68] sm:$0xff]  ;;  %v1201_v19 = vld [vmem:[%s1324_s29 + $0x70] sm:$0xff] }
  0x14   : > { %v1190_v20 = vld [vmem:[%s1324_s29 + $0x18] sm:$0xff] }
  0x15   : > { %v1194_v21 = vld [vmem:[%s1324_s29 + $0x38] sm:$0xff] }
  0x16   : > { %560 = vmatpush.bf16.msra.mxu0 %v1203_v7  ;;  %1208 = vmatpush.bf16.msra.mxu1 %v1203_v7  ;;  %v1198_v22 = vld [vmem:[%s1324_s29 + $0x58] sm:$0xff] }
  0x17   : > { %1209 = vmatpush.bf16.msra.mxu2 %v1203_v7  ;;  %1210 = vmatpush.bf16.msra.mxu3 %v1203_v7  ;;  %v1202_v23 = vld [vmem:[%s1324_s29 + $0x78] sm:$0xff] }
  0x19   : > { %1169 = vmatmul.msk.bf16.vlgmr.msra.gmra.mxu0 %vm497_vm2, %v1187_v8  ;;  %1173 = vmatmul.msk.bf16.vlgmr.msra.gmra.mxu1 %vm497_vm2, %v1191_v9 }
  0x1a   : > { %1177 = vmatmul.msk.bf16.vlgmr.msra.gmra.mxu2 %vm497_vm2, %v1195_v10  ;;  %1181 = vmatmul.msk.bf16.vlgmr.msra.gmra.mxu3 %vm497_vm2, %v1199_v11 }
  0x29   : > { %1170 = vmatmul.msk.bf16.gmra.mxu0 %vm497_vm2, %v1188_v12  ;;  %1174 = vmatmul.msk.bf16.gmra.mxu1 %vm497_vm2, %v1192_v13 }
  0x2a   : > { %1178 = vmatmul.msk.bf16.gmra.mxu2 %vm497_vm2, %v1196_v14  ;;  %1182 = vmatmul.msk.bf16.gmra.mxu3 %vm497_vm2, %v1200_v15 }
  0x39   : > { %1171 = vmatmul.msk.bf16.gmra.mxu0 %vm497_vm2, %v1189_v16  ;;  %1175 = vmatmul.msk.bf16.gmra.mxu1 %vm497_vm2, %v1193_v17 }
  0x3a   : > { %1179 = vmatmul.msk.bf16.gmra.mxu2 %vm497_vm2, %v1197_v18  ;;  %1183 = vmatmul.msk.bf16.gmra.mxu3 %vm497_vm2, %v1201_v19 }
  0x49   : > { %1172 = vmatmul.msk.bf16.gmra.mxu0 %vm497_vm2, %v1190_v20  ;;  %1176 = vmatmul.msk.bf16.gmra.mxu1 %vm497_vm2, %v1194_v21 }
  0x4a   : > { %1180 = vmatmul.msk.bf16.gmra.mxu2 %vm497_vm2, %v1198_v22  ;;  %1184 = vmatmul.msk.bf16.gmra.mxu3 %vm497_vm2, %v1202_v23 }
  0x96   : > { %v1365_v24 = vpop.f32.mrf.mxu0  ;;  %v1367_v25 = vpop.f32.mrf.mxu1 }
  0x97   : > { %v741_v26 = vpack.c.bf16 %v1365_v24, %v1365_v24  ;;  %v749_v27 = vpack.c.bf16 %v1367_v25, %v1367_v25  ;;  %v843_v4 = vmul.f32 %v1365_v24, %v1365_v24 }
  0x99   : > { %774 = vst.msk [vmem:[%s1363_s6] sm:$0xf] %vm773_vm3, %v741_v26 }
  0x9a   : > { %782 = vst.msk [vmem:[%s1363_s6 + $0x20] sm:$0xf] %vm773_vm3, %v749_v27 }
  0x9d   : > { %v1377_v28 = vpop.f32.mrf.mxu2  ;;  %v1385_v34 = vpop.f32.mrf.mxu3 }
  0x9e   : > { %v564_v29 = vpop.f32.mrf.mxu0  ;;  %v1379_v30 = vpop.f32.mrf.mxu1  ;;  %v757_v31 = vpack.c.bf16 %v1377_v28, %v1377_v28  ;;  %v765_v35 = vpack.c.bf16 %v1385_v34, %v1385_v34 }
  0x9f   : > { %v742_v32 = vpack.c.bf16 %v564_v29, %v564_v29  ;;  %v750_v33 = vpack.c.bf16 %v1379_v30, %v1379_v30  ;;  %v844_v3 = vmul.f32 %v564_v29, %v564_v29  ;;  %v806_v6 = vadd.f32 %v564_v29, %v1365_v24 }
  0xa0   : > { %790 = vst.msk [vmem:[%s1363_s6 + $0x40] sm:$0xf] %vm773_vm3, %v757_v31 }
  0xa1   : > { %775 = vst.msk [vmem:[%s1363_s6 + $0x4] sm:$0xf] %vm773_vm3, %v742_v32  ;;  %v875_v7 = vadd.f32 %v844_v3, %v843_v4 }
  0xa2   : > { %783 = vst.msk [vmem:[%s1363_s6 + $0x24] sm:$0xf] %vm773_vm3, %v750_v33 }
  0xa3   : > { %798 = vst.msk [vmem:[%s1363_s6 + $0x60] sm:$0xf] %vm773_vm3, %v765_v35 }
  0xa5   : > { %v1397_v36 = vpop.f32.mrf.mxu2  ;;  %v1405_v42 = vpop.f32.mrf.mxu3 }
  0xa6   : > { %v567_v37 = vpop.f32.mrf.mxu0  ;;  %v1399_v38 = vpop.f32.mrf.mxu1  ;;  %v758_v39 = vpack.c.bf16 %v1397_v36, %v1397_v36  ;;  %v766_v43 = vpack.c.bf16 %v1405_v42, %v1405_v42 }
  0xa7   : > { %v743_v40 = vpack.c.bf16 %v567_v37, %v567_v37  ;;  %v751_v41 = vpack.c.bf16 %v1399_v38, %v1399_v38  ;;  %v845_v5 = vmul.f32 %v567_v37, %v567_v37  ;;  %v807_v9 = vadd.f32 %v806_v6, %v567_v37 }
  0xa8   : > { %791 = vst.msk [vmem:[%s1363_s6 + $0x44] sm:$0xf] %vm773_vm3, %v758_v39 }
  0xa9   : > { %776 = vst.msk [vmem:[%s1363_s6 + $0x8] sm:$0xf] %vm773_vm3, %v743_v40  ;;  %v876_v11 = vadd.f32 %v875_v7, %v845_v5 }
  0xaa   : > { %784 = vst.msk [vmem:[%s1363_s6 + $0x28] sm:$0xf] %vm773_vm3, %v751_v41 }
  0xab   : > { %799 = vst.msk [vmem:[%s1363_s6 + $0x64] sm:$0xf] %vm773_vm3, %v766_v43 }
  0xad   : > { %v1417_v44 = vpop.f32.mrf.mxu2  ;;  %v1425_v50 = vpop.f32.mrf.mxu3 }
  0xae   : > { %v569_v45 = vpop.f32.mrf.mxu0  ;;  %v1419_v46 = vpop.f32.mrf.mxu1  ;;  %v759_v47 = vpack.c.bf16 %v1417_v44, %v1417_v44  ;;  %v767_v58 = vpack.c.bf16 %v1425_v50, %v1425_v50 }
  0xaf   : > { %v744_v48 = vpack.c.bf16 %v569_v45, %v569_v45  ;;  %v752_v49 = vpack.c.bf16 %v1419_v46, %v1419_v46  ;;  %v846_v8 = vmul.f32 %v569_v45, %v569_v45  ;;  %v808_v16 = vadd.f32 %v807_v9, %v569_v45 }
  0xb0   : > { %792 = vst.msk [vmem:[%s1363_s6 + $0x48] sm:$0xf] %vm773_vm3, %v759_v47 }
  0xb1   : > { %777 = vst.msk [vmem:[%s1363_s6 + $0xc] sm:$0xf] %vm773_vm3, %v744_v48  ;;  %v877_v20 = vadd.f32 %v876_v11, %v846_v8 }
  0xb2   : > { %785 = vst.msk [vmem:[%s1363_s6 + $0x2c] sm:$0xf] %vm773_vm3, %v752_v49  ;;  %v851_v49 = vmul.f32 %v1367_v25, %v1367_v25 }
  0xb3   : > { %800 = vst.msk [vmem:[%s1363_s6 + $0x68] sm:$0xf] %vm773_vm3, %v767_v58 }
  0xb5   : > { %v1433_v51 = vpop.f32.mrf.mxu2  ;;  %v1441_v57 = vpop.f32.mrf.mxu3 }
  0xb6   : > { %v572_v52 = vpop.f32.mrf.mxu0  ;;  %v1435_v53 = vpop.f32.mrf.mxu1  ;;  %v760_v54 = vpack.c.bf16 %v1433_v51, %v1433_v51  ;;  %v768_v59 = vpack.c.bf16 %v1441_v57, %v1441_v57 }
  0xb7   : > { %v745_v55 = vpack.c.bf16 %v572_v52, %v572_v52  ;;  %v753_v56 = vpack.c.bf16 %v1435_v53, %v1435_v53  ;;  %v847_v12 = vmul.f32 %v572_v52, %v572_v52  ;;  %v809_v24 = vadd.f32 %v808_v16, %v572_v52 }
  0xb8   : > { %793 = vst.msk [vmem:[%s1363_s6 + $0x4c] sm:$0xf] %vm773_vm3, %v760_v54 }
  0xb9   : > { %778 = vst.msk [vmem:[%s1363_s6 + $0x10] sm:$0xf] %vm773_vm3, %v745_v55  ;;  %v878_v26 = vadd.f32 %v877_v20, %v847_v12  ;;  %v852_v55 = vmul.f32 %v1379_v30, %v1379_v30 }
  0xba   : > { %786 = vst.msk [vmem:[%s1363_s6 + $0x30] sm:$0xf] %vm773_vm3, %v753_v56 }
  0xbb   : > { %801 = vst.msk [vmem:[%s1363_s6 + $0x6c] sm:$0xf] %vm773_vm3, %v768_v59  ;;  %v853_v59 = vmul.f32 %v1399_v38, %v1399_v38 }
  0xbd   : > { %v1457_v60 = vpop.f32.mrf.mxu2  ;;  %v1465_v2 = vpop.f32.mrf.mxu3 }
  0xbe   : > { %v574_v61 = vpop.f32.mrf.mxu0  ;;  %v1459_v62 = vpop.f32.mrf.mxu1  ;;  %v761_v63 = vpack.c.bf16 %v1457_v60, %v1457_v60  ;;  %v769_v22 = vpack.c.bf16 %v1465_v2, %v1465_v2 }
  0xbf   : > { %v746_v0 = vpack.c.bf16 %v574_v61, %v574_v61  ;;  %v754_v1 = vpack.c.bf16 %v1459_v62, %v1459_v62  ;;  %v848_v21 = vmul.f32 %v574_v61, %v574_v61  ;;  %v810_v29 = vadd.f32 %v809_v24, %v574_v61 }
  0xc0   : > { %794 = vst.msk [vmem:[%s1363_s6 + $0x50] sm:$0xf] %vm773_vm3, %v761_v63 }
  0xc1   : > { %779 = vst.msk [vmem:[%s1363_s6 + $0x14] sm:$0xf] %vm773_vm3, %v746_v0  ;;  %v879_v31 = vadd.f32 %v878_v26, %v848_v21 }
  0xc2   : > { %787 = vst.msk [vmem:[%s1363_s6 + $0x34] sm:$0xf] %vm773_vm3, %v754_v1  ;;  %v854_v1 = vmul.f32 %v1419_v46, %v1419_v46 }
  0xc3   : > { %802 = vst.msk [vmem:[%s1363_s6 + $0x70] sm:$0xf] %vm773_vm3, %v769_v22  ;;  %v860_v22 = vmul.f32 %v1397_v36, %v1397_v36 }
  0xc5   : > { %v1476_v10 = vpop.f32.mrf.mxu2  ;;  %v1480_v19 = vpop.f32.mrf.mxu3 }
  0xc6   : > { %v577_v13 = vpop.f32.mrf.mxu0  ;;  %v597_v14 = vpop.f32.mrf.mxu1  ;;  %v762_v15 = vpack.c.bf16 %v1476_v10, %v1476_v10  ;;  %v770_v23 = vpack.c.bf16 %v1480_v19, %v1480_v19 }
  0xc7   : > { %v747_v17 = vpack.c.bf16 %v577_v13, %v577_v13  ;;  %v755_v18 = vpack.c.bf16 %v597_v14, %v597_v14  ;;  %v849_v27 = vmul.f32 %v577_v13, %v577_v13  ;;  %v811_v32 = vadd.f32 %v810_v29, %v577_v13 }
  0xc8   : > { %795 = vst.msk [vmem:[%s1363_s6 + $0x54] sm:$0xf] %vm773_vm3, %v762_v15  ;;  %v857_v13 = vmul.f32 %v597_v14, %v597_v14 }
  0xc9   : > { %780 = vst.msk [vmem:[%s1363_s6 + $0x18] sm:$0xf] %vm773_vm3, %v747_v17  ;;  %v880_v35 = vadd.f32 %v879_v31, %v849_v27  ;;  %v862_v27 = vmul.f32 %v1433_v51, %v1433_v51 }
  0xca   : > { %788 = vst.msk [vmem:[%s1363_s6 + $0x38] sm:$0xf] %vm773_vm3, %v755_v18 }
  0xcb   : > { %803 = vst.msk [vmem:[%s1363_s6 + $0x74] sm:$0xf] %vm773_vm3, %v770_v23 }
  0xcd   : > { %v1496_v33 = vpop.f32.mrf.mxu2  ;;  %v1500_v48 = vpop.f32.mrf.mxu3 }
  0xce   : > { %v579_v37 = vpop.f32.mrf.mxu0  ;;  %v599_v39 = vpop.f32.mrf.mxu1  ;;  %v763_v40 = vpack.c.bf16 %v1496_v33, %v1496_v33 }
  0xcf   : > { %v748_v41 = vpack.c.bf16 %v579_v37, %v579_v37  ;;  %v812_v43 = vadd.f32 %v811_v32, %v579_v37  ;;  %v850_v45 = vmul.f32 %v579_v37, %v579_v37  ;;  %v756_v47 = vpack.c.bf16 %v599_v39, %v599_v39 }
  0xd0   : > { %796 = vst.msk [vmem:[%s1363_s6 + $0x58] sm:$0xf] %vm773_vm3, %v763_v40  ;;  %v858_v18 = vmul.f32 %v599_v39, %v599_v39  ;;  %v864_v37 = vmul.f32 %v1476_v10, %v1476_v10 }
  0xd1   : > { %781 = vst.msk [vmem:[%s1363_s6 + $0x1c] sm:$0xf] %vm773_vm3, %v748_v41  ;;  %v813_v52 = vadd.f32 %v812_v43, %v1367_v25  ;;  %v881_v54 = vadd.f32 %v880_v35, %v850_v45  ;;  %v865_v41 = vmul.f32 %v1496_v33, %v1496_v33 }
  0xd2   : > { %789 = vst.msk [vmem:[%s1363_s6 + $0x3c] sm:$0xf] %vm773_vm3, %v756_v47  ;;  %v867_v47 = vmul.f32 %v1385_v34, %v1385_v34 }
  0xd3   : > { %v814_v56 = vadd.f32 %v813_v52, %v1379_v30  ;;  %v882_v58 = vadd.f32 %v881_v54, %v851_v49  ;;  %v771_v30 = vpack.c.bf16 %v1500_v48, %v1500_v48  ;;  %v868_v52 = vmul.f32 %v1405_v42, %v1405_v42 }
  0xd5   : > { %v815_v61 = vadd.f32 %v814_v56, %v1399_v38  ;;  %v883_v63 = vadd.f32 %v882_v58, %v852_v55  ;;  %v619_v0 = vpop.f32.mrf.mxu2  ;;  %v1522_v5 = vpop.f32.mrf.mxu3  ;;  %v855_v38 = vmul.f32 %v1435_v53, %v1435_v53  ;;  %804 = vst.msk [vmem:[%s1363_s6 + $0x78] sm:$0xf] %vm773_vm3, %v771_v30  ;;  %v869_v55 = vmul.f32 %v1425_v50, %v1425_v50 }
  0xd6   : > { %v764_v25 = vpack.c.bf16 %v619_v0, %v619_v0  ;;  %v772_v6 = vpack.c.bf16 %v1522_v5, %v1522_v5  ;;  %v866_v45 = vmul.f32 %v619_v0, %v619_v0  ;;  %v870_v58 = vmul.f32 %v1441_v57, %v1441_v57 }
  0xd7   : > { %v884_v3 = vadd.f32 %v883_v63, %v853_v59  ;;  %v816_v4 = vadd.f32 %v815_v61, %v1419_v46  ;;  %v856_v46 = vmul.f32 %v1459_v62, %v1459_v62  ;;  %v871_v61 = vmul.f32 %v1465_v2, %v1465_v2 }
  0xd8   : > { %797 = vst.msk [vmem:[%s1363_s6 + $0x5c] sm:$0xf] %vm773_vm3, %v764_v25  ;;  %v872_v25 = vmul.f32 %v1480_v19, %v1480_v19 }
  0xd9   : > { %v817_v7 = vadd.f32 %v816_v4, %v1435_v53  ;;  %v885_v8 = vadd.f32 %v884_v3, %v854_v1  ;;  %805 = vst.msk [vmem:[%s1363_s6 + $0x7c] sm:$0xf] %vm773_vm3, %v772_v6  ;;  %v859_v53 = vmul.f32 %v1377_v28, %v1377_v28  ;;  %v873_v4 = vmul.f32 %v1500_v48, %v1500_v48 }
  0xdb   : > { %v818_v9 = vadd.f32 %v817_v7, %v1459_v62  ;;  %v886_v11 = vadd.f32 %v885_v8, %v855_v38  ;;  %v861_v62 = vmul.f32 %v1417_v44, %v1417_v44 }
  0xdd   : > { %v819_v12 = vadd.f32 %v818_v9, %v597_v14  ;;  %v887_v15 = vadd.f32 %v886_v11, %v856_v46 }
  0xdf   : > { %v888_v16 = vadd.f32 %v887_v15, %v857_v13  ;;  %v820_v17 = vadd.f32 %v819_v12, %v599_v39 }
  0xe1   : > { %v821_v20 = vadd.f32 %v820_v17, %v1377_v28  ;;  %v889_v21 = vadd.f32 %v888_v16, %v858_v18  ;;  %v863_v28 = vmul.f32 %v1457_v60, %v1457_v60 }
  0xe3   : > { %v822_v23 = vadd.f32 %v821_v20, %v1397_v36  ;;  %v890_v24 = vadd.f32 %v889_v21, %v859_v53 }
  0xe5   : > { %v823_v14 = vadd.f32 %v822_v23, %v1417_v44  ;;  %v891_v26 = vadd.f32 %v890_v24, %v860_v22 }
  0xe7   : > { %v892_v29 = vadd.f32 %v891_v26, %v861_v62  ;;  %v824_v31 = vadd.f32 %v823_v14, %v1433_v51 }
  0xe9   : > { %v825_v32 = vadd.f32 %v824_v31, %v1457_v60  ;;  %v893_v35 = vadd.f32 %v892_v29, %v862_v27 }
  0xeb   : > { %v826_v36 = vadd.f32 %v825_v32, %v1476_v10  ;;  %v894_v39 = vadd.f32 %v893_v35, %v863_v28 }
  0xed   : > { %v895_v44 = vadd.f32 %v894_v39, %v864_v37  ;;  %v827_v40 = vadd.f32 %v826_v36, %v1496_v33 }
  0xef   : > { %v896_v43 = vadd.f32 %v895_v44, %v865_v41  ;;  %v828_v51 = vadd.f32 %v827_v40, %v619_v0 }
  0xf1   : > { %v829_v60 = vadd.f32 %v828_v51, %v1385_v34  ;;  %v897_v49 = vadd.f32 %v896_v43, %v866_v45 }
  0xf3   : > { %v830_v10 = vadd.f32 %v829_v60, %v1405_v42  ;;  %v898_v54 = vadd.f32 %v897_v49, %v867_v47 }
  0xf5   : > { %v831_v33 = vadd.f32 %v830_v10, %v1425_v50  ;;  %v899_v56 = vadd.f32 %v898_v54, %v868_v52 }
  0xf7   : > { %v900_v59 = vadd.f32 %v899_v56, %v869_v55  ;;  %v832_v34 = vadd.f32 %v831_v33, %v1441_v57 }
  0xf9   : > { %v833_v42 = vadd.f32 %v832_v34, %v1465_v2  ;;  %v901_v63 = vadd.f32 %v900_v59, %v870_v58  ;;  %v874_v2 = vmul.f32 %v1522_v5, %v1522_v5 }
  0xfb   : > { %v834_v0 = vadd.f32 %v833_v42, %v1480_v19  ;;  %v902_v50 = vadd.f32 %v901_v63, %v871_v61 }
  0xfd   : > { %v903_v1 = vadd.f32 %v902_v50, %v872_v25  ;;  %v835_v3 = vadd.f32 %v834_v0, %v1500_v48 }
  0xff   : > { %v904_v57 = vadd.f32 %v903_v1, %v873_v4  ;;  %v836_v30 = vadd.f32 %v835_v3, %v1522_v5 }
 0x101   : > { %v837_v6 = vrot.slane %v836_v30, 4  ;;  %v905_v38 = vadd.f32 %v904_v57, %v874_v2 }
 0x103   : > { %v838_v7 = vadd.f32 %v837_v6, %v836_v30  ;;  %v906_v8 = vrot.slane %v905_v38, 4 }
 0x105   : > { %v839_v19 = vrot.slane %v838_v7, 2  ;;  %v907_v46 = vadd.f32 %v906_v8, %v905_v38 }
 0x107   : > { %v840_v9 = vadd.f32 %v839_v19, %v838_v7  ;;  %v908_v11 = vrot.slane %v907_v46, 2 }
 0x109   : > { %v841_v12 = vrot.slane %v840_v9, 1  ;;  %v909_v13 = vadd.f32 %v908_v11, %v907_v46 }
 0x10b   : > { %v842_v48 = vadd.f32 %v841_v12, %v840_v9  ;;  %v910_v15 = vrot.slane %v909_v13, 1 }
 0x10d   : > { %v911_v5 = vadd.f32 %v910_v15, %v909_v13  ;;  %912 = vst [vmem:[%s293_s10] sm:$0xff] %v842_v48 }
 0x10f   : > { %913 = vst [vmem:[%s300_s13] sm:$0xff] %v911_v5 }
 0x110 PF: > { %s15_s17 = sadd.s32 1, %s1258_s17   ;;  %s1605_s15 = smov %s1254_s16 }
 0x111   : > { %p12_p6 = scmp.ge.s32.totalorder %s15_s17, 10   ;;  %s1606_s16 = smov %s1608_s18 }
 0x113   :  { %14 = sbr.rel (!%p12_p6) target bundleno = 2 (0x2), region = 93 }

// kernel: cnn_block_apply.3
= control target key start
LH: loop header
LB: loop body
LE: loop exit
PB: predicated region body
PF: predicated region fallthrough
CT: control target
= control target key end

     0   :  { %8 = vsyncpa [#allocation3], 0  ;;  %s1529_s0 = inlined_call_operand.vmem [shape: bf16[2048,32], index: 0, kind: input, shape index: {}]   ;;  %s1530_s1 = inlined_call_operand.vmem [shape: f32[1,32], index: 1, kind: input, shape index: {}]   ;;  %s1531_s2 = inlined_call_operand.vmem [shape: f32[1,32], index: 2, kind: input, shape index: {}]   ;;  %s1532_s3 = inlined_call_operand.hbm [shape: bf16[2048,32], index: 3, kind: output, shape index: {}]  }
   0x1   :  { %10 = vsyncpa [#allocation3 + $0x1], 0  ;;  %s1138_s12 = smov 0   ;;  %s1140_s13 = smov 0  }
   0x2   :  { %s1142_s14 = smov 0   ;;  %s1144_s15 = smov 0  }
   0x3 LB: > { %s1159_s16 = sadd.s32 4294967295, %s1114_s15   ;;  %s835_s17 = sadd.s32 4294967294, %s1114_s15   ;;  %s1114_s15 = sphi %s1144_s15, %s1538_s15   ;;  %s1110_s14 = sphi %s1142_s14, %s1537_s14   ;;  %s1106_s13 = sphi %s1140_s13, %s1536_s13   ;;  %s1102_s12 = sphi %s1138_s12, %s1535_s12  }
   0x4   : > { %s1163_s18 = sadd.s32 1, %s1114_s15   ;;  %s91_s19 = sadd.s32 1, %s1110_s14 }
   0x5   : > { %s88_s20 = ssub.s32 %s1114_s15, %s1163_s18  ;;  %p101_p0 = scmp.ne.s32.totalorder %s1110_s14, %s1106_s13 }
   0x6   : > { %p89_p1 = scmp.eq.s32.totalorder %s88_s20, 0  ;;  %p102_p2 = scmp.eq.s32.totalorder %s1159_s16, 3 }
   0x7   : > { %p107_p3 = scmp.ne.s32.totalorder %s1106_s13, %s1102_s12  ;;  %p108_p4 = scmp.eq.s32.totalorder %s835_s17, 3 }
   0x8   : > { %s1174_s21 = scalar_select %p89_p1, %s1110_s14, %s91_s19  }
   0x9   : > { %p1176_p5 = por %p102_p2, %p101_p0  ;;  %p1180_p6 = por %p108_p4, %p107_p3 }
   0xa   : > { %p838_p7 = scmp.ge.s32.totalorder %s1114_s15, 1  ;;  %p141_p8 = scmp.lt.s32.totalorder %s1114_s15, 5 }
   0xc   : > { %p142_p9 = pnand %p838_p7, %p141_p8 }
   0xd   : > { %s840_s24 = sshll.u32 (!%p142_p9), %s1159_s16, 6  ;;  %s162_s6 = sand.u32 (!%p142_p9), 1, %s1106_s13  }
   0xe   : > { %145 = sbr.rel (%p142_p9) target bundleno = 145 (0x91), region = 32  ;;  %p166_p10 = scmp.lt.s32.totalorder (!%p142_p9), %s840_s24, 255 }
   0xf   : > { %s839_s7 = sshll.u32 (!%p142_p9), %s162_s6, 8  ;;  %s847_s11 = sshll.u32 (!%p142_p9), %s1159_s16, 8 }
  0x10   : > { %s1228_s8 = scalar_lea.vmem (!%p142_p9), [#allocation2], %s839_s7  ;;  %s758_s27 = scalar_lea.sflag (!%p142_p9), [#allocation3], %s162_s6 }
  0x11   : > { %s770_s16 = sshll.u32 (!%p142_p9), %s1228_s8, 4  ;;  %s1072_s5 = scalar_lea.hbm (!%p142_p9), %s1532_s3, 1024  ;;  %s771_s16 = int_to_ptr.vmem [resolvable:$true] %s770_s16 }
  0x13   : > { %s1540_s24 = smov (!%p166_p10, %s840_s24), 255  ;;  %v1195_v0 = vld [vmem:[%s1530_s1] ss:$0 sm:$0xff]  ;;  %vm692_vm0 = vcmask 257024  }
  0x14   : > { %s841_s25 = sshll.u32 %s1540_s24, 2  ;;  %v1203_v5 = vld [vmem:[%s1531_s2] ss:$0 sm:$0xff] }
  0x15   : > { %s1190_s28 = scalar_lea.vmem %s1529_s0, %s841_s25  ;;  %s769_s25 = scalar_lea.hbm %s1532_s3, %s847_s11 }
  0x16   : > { %v849_v1 = vld [vmem:[%s1190_s28] sm:$0xff]   ;;  %v976_v2 = vld [vmem:[%s1190_s28 + $0x8] sm:$0xff]   ;;  %v977_v3 = vld [vmem:[%s1190_s28 + $0x10] sm:$0xff]   ;;  %s772_s26 = sshll.u32 %s769_s25, 4  ;;  %s773_s26 = int_to_ptr.hbm [resolvable:$true] %s772_s26 }
  0x17   : > { %v850_v4 = vunpack.c.l.bf16 %v849_v1  ;;  %v851_v6 = vunpack.c.h.bf16 %v849_v1  ;;  %v854_v7 = vunpack.c.l.bf16 %v976_v2  ;;  %v855_v8 = vunpack.c.h.bf16 %v976_v2  ;;  %v978_v9 = vld [vmem:[%s1190_s28 + $0x18] sm:$0xff]   ;;  %v979_v41 = vld [vmem:[%s1190_s28 + $0x20] sm:$0xff]   ;;  %v980_v45 = vld [vmem:[%s1190_s28 + $0x28] sm:$0xff]  }
  0x18   : > { %v858_v10 = vunpack.c.l.bf16 %v977_v3  ;;  %v859_v11 = vunpack.c.h.bf16 %v977_v3  ;;  %v862_v12 = vunpack.c.l.bf16 %v978_v9  ;;  %v863_v13 = vunpack.c.h.bf16 %v978_v9  ;;  %v981_v46 = vld [vmem:[%s1190_s28 + $0x30] sm:$0xff]   ;;  %v982_v61 = vld [vmem:[%s1190_s28 + $0x38] sm:$0xff]  }
  0x19   : > { %v304_v14 = vmul.f32 %v1195_v0, %v850_v4  ;;  %v305_v15 = vmul.f32 %v1195_v0, %v851_v6  ;;  %v306_v16 = vmul.f32 %v1195_v0, %v854_v7  ;;  %v307_v17 = vmul.f32 %v1195_v0, %v855_v8 }
  0x1a   : > { %v308_v18 = vmul.f32 %v1195_v0, %v858_v10  ;;  %v309_v19 = vmul.f32 %v1195_v0, %v859_v11  ;;  %v310_v20 = vmul.f32 %v1195_v0, %v862_v12  ;;  %v311_v21 = vmul.f32 %v1195_v0, %v863_v13 }
  0x1b   : > { %v372_v22 = vadd.f32 %v1203_v5, %v304_v14  ;;  %v373_v23 = vadd.f32 %v1203_v5, %v305_v15  ;;  %v374_v24 = vadd.f32 %v1203_v5, %v306_v16  ;;  %v375_v25 = vadd.f32 %v1203_v5, %v307_v17 }
  0x1c   : > { %v376_v26 = vadd.f32 %v1203_v5, %v308_v18  ;;  %v377_v27 = vadd.f32 %v1203_v5, %v309_v19  ;;  %v378_v28 = vadd.f32 %v1203_v5, %v310_v20  ;;  %v379_v29 = vadd.f32 %v1203_v5, %v311_v21 }
  0x1d   : > { %vm436_vm1 = vcmp.gt.f32.partialorder %v372_v22, 0.0  ;;  %v500_v30 = vmul.f32 0.1, %v372_v22  ;;  %vm437_vm2 = vcmp.gt.f32.partialorder %v373_v23, 0.0  ;;  %v501_v31 = vmul.f32 0.1, %v373_v23 }
  0x1e   : > { %vm438_vm3 = vcmp.gt.f32.partialorder %v374_v24, 0.0  ;;  %v502_v32 = vmul.f32 0.1, %v374_v24  ;;  %vm439_vm4 = vcmp.gt.f32.partialorder %v375_v25, 0.0  ;;  %v503_v33 = vmul.f32 0.1, %v375_v25 }
  0x1f   : > { %v564_v34 = vsel %vm436_vm1, %v372_v22, %v500_v30  ;;  %v565_v35 = vsel %vm437_vm2, %v373_v23, %v501_v31  ;;  %vm440_vm5 = vcmp.gt.f32.partialorder %v376_v26, 0.0  ;;  %v504_v36 = vmul.f32 0.1, %v376_v26  ;;  %v983_v23 = vld [vmem:[%s1190_s28 + $0x40] sm:$0xff]  }
  0x20   : > { %v628_v37 = vpack.c.bf16 %v564_v34, %v564_v34  ;;  %v629_v38 = vpack.c.bf16 %v565_v35, %v565_v35  ;;  %v566_v39 = vsel %vm438_vm3, %v374_v24, %v502_v32  ;;  %v567_v40 = vsel %vm439_vm4, %v375_v25, %v503_v33 }
  0x21   : > { %v630_v42 = vpack.c.bf16 %v566_v39, %v566_v39  ;;  %v631_v43 = vpack.c.bf16 %v567_v40, %v567_v40  ;;  %v568_v44 = vsel %vm440_vm5, %v376_v26, %v504_v36  ;;  %vm441_vm6 = vcmp.gt.f32.partialorder %v377_v27, 0.0 }
  0x22   : > { %693 = vst.msk [vmem:[%s1228_s8] sm:$0xf] %vm692_vm0, %v628_v37  ;;  %v632_v47 = vpack.c.bf16 %v568_v44, %v568_v44  ;;  %v505_v48 = vmul.f32 0.1, %v377_v27  ;;  %vm442_vm7 = vcmp.gt.f32.partialorder %v378_v28, 0.0  ;;  %vm443_vm8 = vcmp.gt.f32.partialorder %v379_v29, 0.0 }
  0x23   : > { %694 = vst.msk [vmem:[%s1228_s8 + $0x4] sm:$0xf] %vm692_vm0, %v629_v38  ;;  %v506_v49 = vmul.f32 0.1, %v378_v28  ;;  %v507_v50 = vmul.f32 0.1, %v379_v29  ;;  %v866_v51 = vunpack.c.l.bf16 %v979_v41  ;;  %v867_v52 = vunpack.c.h.bf16 %v979_v41 }
  0x24   : > { %695 = vst.msk [vmem:[%s1228_s8 + $0x8] sm:$0xf] %vm692_vm0, %v630_v42  ;;  %v569_v53 = vsel %vm441_vm6, %v377_v27, %v505_v48  ;;  %v870_v54 = vunpack.c.l.bf16 %v980_v45  ;;  %v871_v55 = vunpack.c.h.bf16 %v980_v45  ;;  %v874_v56 = vunpack.c.l.bf16 %v981_v46 }
  0x25   : > { %696 = vst.msk [vmem:[%s1228_s8 + $0xc] sm:$0xf] %vm692_vm0, %v631_v43  ;;  %v633_v57 = vpack.c.bf16 %v569_v53, %v569_v53  ;;  %v570_v58 = vsel %vm442_vm7, %v378_v28, %v506_v49  ;;  %v571_v59 = vsel %vm443_vm8, %v379_v29, %v507_v50  ;;  %v312_v60 = vmul.f32 %v1195_v0, %v866_v51  ;;  %v984_v28 = vld [vmem:[%s1190_s28 + $0x48] sm:$0xff]  }
  0x26   : > { %697 = vst.msk [vmem:[%s1228_s8 + $0x10] sm:$0xf] %vm692_vm0, %v632_v47  ;;  %v634_v62 = vpack.c.bf16 %v570_v58, %v570_v58  ;;  %v635_v63 = vpack.c.bf16 %v571_v59, %v571_v59  ;;  %v313_v1 = vmul.f32 %v1195_v0, %v867_v52  ;;  %v314_v2 = vmul.f32 %v1195_v0, %v870_v54  ;;  %v985_v54 = vld [vmem:[%s1190_s28 + $0x50] sm:$0xff]   ;;  %v986_v58 = vld [vmem:[%s1190_s28 + $0x58] sm:$0xff]  }
  0x27   : > { %698 = vst.msk [vmem:[%s1228_s8 + $0x14] sm:$0xf] %vm692_vm0, %v633_v57  ;;  %v380_v3 = vadd.f32 %v1203_v5, %v312_v60  ;;  %v315_v4 = vmul.f32 %v1195_v0, %v871_v55  ;;  %v316_v6 = vmul.f32 %v1195_v0, %v874_v56  ;;  %v875_v7 = vunpack.c.h.bf16 %v981_v46 }
  0x28   : > { %699 = vst.msk [vmem:[%s1228_s8 + $0x18] sm:$0xf] %vm692_vm0, %v634_v62  ;;  %v381_v8 = vadd.f32 %v1203_v5, %v313_v1  ;;  %v382_v9 = vadd.f32 %v1203_v5, %v314_v2  ;;  %v878_v10 = vunpack.c.l.bf16 %v982_v61  ;;  %v879_v11 = vunpack.c.h.bf16 %v982_v61 }
  0x29   : > { %700 = vst.msk [vmem:[%s1228_s8 + $0x1c] sm:$0xf] %vm692_vm0, %v635_v63  ;;  %vm444_vm9 = vcmp.gt.f32.partialorder %v380_v3, 0.0  ;;  %v508_v12 = vmul.f32 0.1, %v380_v3  ;;  %v383_v13 = vadd.f32 %v1203_v5, %v315_v4  ;;  %v384_v14 = vadd.f32 %v1203_v5, %v316_v6 }
  0x2a   : > { %vm445_vm10 = vcmp.gt.f32.partialorder %v381_v8, 0.0  ;;  %v509_v15 = vmul.f32 0.1, %v381_v8  ;;  %vm446_vm11 = vcmp.gt.f32.partialorder %v382_v9, 0.0  ;;  %v510_v16 = vmul.f32 0.1, %v382_v9 }
  0x2b   : > { %v572_v17 = vsel %vm444_vm9, %v380_v3, %v508_v12  ;;  %vm447_vm12 = vcmp.gt.f32.partialorder %v383_v13, 0.0  ;;  %v511_v18 = vmul.f32 0.1, %v383_v13  ;;  %vm448_vm13 = vcmp.gt.f32.partialorder %v384_v14, 0.0 }
  0x2c   : > { %v636_v19 = vpack.c.bf16 %v572_v17, %v572_v17  ;;  %v573_v20 = vsel %vm445_vm10, %v381_v8, %v509_v15  ;;  %v574_v21 = vsel %vm446_vm11, %v382_v9, %v510_v16  ;;  %v512_v22 = vmul.f32 0.1, %v384_v14  ;;  %v988_v15 = vld [vmem:[%s1190_s28 + $0x68] sm:$0xff]  }
  0x2d   : > { %v637_v24 = vpack.c.bf16 %v573_v20, %v573_v20  ;;  %v638_v25 = vpack.c.bf16 %v574_v21, %v574_v21  ;;  %v575_v26 = vsel %vm447_vm12, %v383_v13, %v511_v18  ;;  %v317_v27 = vmul.f32 %v1195_v0, %v875_v7  ;;  %v987_v7 = vld [vmem:[%s1190_s28 + $0x60] sm:$0xff]  }
  0x2e   : > { %701 = vst.msk [vmem:[%s1228_s8 + $0x20] sm:$0xf] %vm692_vm0, %v636_v19  ;;  %v639_v29 = vpack.c.bf16 %v575_v26, %v575_v26  ;;  %v576_v30 = vsel %vm448_vm13, %v384_v14, %v512_v22  ;;  %v318_v31 = vmul.f32 %v1195_v0, %v878_v10  ;;  %v319_v32 = vmul.f32 %v1195_v0, %v879_v11 }
  0x2f   : > { %702 = vst.msk [vmem:[%s1228_s8 + $0x24] sm:$0xf] %vm692_vm0, %v637_v24  ;;  %v640_v33 = vpack.c.bf16 %v576_v30, %v576_v30  ;;  %v385_v34 = vadd.f32 %v1203_v5, %v317_v27  ;;  %v882_v35 = vunpack.c.l.bf16 %v983_v23  ;;  %v883_v36 = vunpack.c.h.bf16 %v983_v23 }
  0x30   : > { %703 = vst.msk [vmem:[%s1228_s8 + $0x28] sm:$0xf] %vm692_vm0, %v638_v25  ;;  %v386_v37 = vadd.f32 %v1203_v5, %v318_v31  ;;  %v387_v38 = vadd.f32 %v1203_v5, %v319_v32  ;;  %v886_v39 = vunpack.c.l.bf16 %v984_v28  ;;  %v887_v40 = vunpack.c.h.bf16 %v984_v28 }
  0x31   : > { %704 = vst.msk [vmem:[%s1228_s8 + $0x2c] sm:$0xf] %vm692_vm0, %v639_v29  ;;  %vm449_vm14 = vcmp.gt.f32.partialorder %v385_v34, 0.0  ;;  %v513_v41 = vmul.f32 0.1, %v385_v34  ;;  %v320_v42 = vmul.f32 %v1195_v0, %v882_v35  ;;  %v321_v43 = vmul.f32 %v1195_v0, %v883_v36 }
  0x32   : > { %705 = vst.msk [vmem:[%s1228_s8 + $0x30] sm:$0xf] %vm692_vm0, %v640_v33  ;;  %vm450_vm15 = vcmp.gt.f32.partialorder %v386_v37, 0.0  ;;  %v514_v44 = vmul.f32 0.1, %v386_v37  ;;  %vm451_vm1 = vcmp.gt.f32.partialorder %v387_v38, 0.0  ;;  %v322_v45 = vmul.f32 %v1195_v0, %v886_v39 }
  0x33   : > { %v577_v46 = vsel %vm449_vm14, %v385_v34, %v513_v41  ;;  %v515_v47 = vmul.f32 0.1, %v387_v38  ;;  %v388_v48 = vadd.f32 %v1203_v5, %v320_v42  ;;  %v389_v49 = vadd.f32 %v1203_v5, %v321_v43 }
  0x34   : > { %v641_v50 = vpack.c.bf16 %v577_v46, %v577_v46  ;;  %v578_v51 = vsel %vm450_vm15, %v386_v37, %v514_v44  ;;  %v390_v52 = vadd.f32 %v1203_v5, %v322_v45  ;;  %v323_v53 = vmul.f32 %v1195_v0, %v887_v40  ;;  %v989_v40 = vld [vmem:[%s1190_s28 + $0x70] sm:$0xff]  }
  0x35   : > { %v642_v55 = vpack.c.bf16 %v578_v51, %v578_v51  ;;  %v579_v56 = vsel %vm451_vm1, %v387_v38, %v515_v47  ;;  %vm452_vm2 = vcmp.gt.f32.partialorder %v388_v48, 0.0  ;;  %v516_v57 = vmul.f32 0.1, %v388_v48  ;;  %v990_v51 = vld [vmem:[%s1190_s28 + $0x78] sm:$0xff]  }
  0x36   : > { %706 = vst.msk [vmem:[%s1228_s8 + $0x34] sm:$0xf] %vm692_vm0, %v641_v50  ;;  %v643_v59 = vpack.c.bf16 %v579_v56, %v579_v56  ;;  %vm453_vm3 = vcmp.gt.f32.partialorder %v389_v49, 0.0  ;;  %v517_v60 = vmul.f32 0.1, %v389_v49  ;;  %vm454_vm4 = vcmp.gt.f32.partialorder %v390_v52, 0.0 }
  0x37   : > { %707 = vst.msk [vmem:[%s1228_s8 + $0x38] sm:$0xf] %vm692_vm0, %v642_v55  ;;  %v580_v61 = vsel %vm452_vm2, %v388_v48, %v516_v57  ;;  %v518_v62 = vmul.f32 0.1, %v390_v52  ;;  %v391_v63 = vadd.f32 %v1203_v5, %v323_v53  ;;  %v890_v1 = vunpack.c.l.bf16 %v985_v54 }
  0x38   : > { %708 = vst.msk [vmem:[%s1228_s8 + $0x3c] sm:$0xf] %vm692_vm0, %v643_v59  ;;  %v644_v2 = vpack.c.bf16 %v580_v61, %v580_v61  ;;  %v581_v3 = vsel %vm453_vm3, %v389_v49, %v517_v60  ;;  %v891_v4 = vunpack.c.h.bf16 %v985_v54  ;;  %v894_v6 = vunpack.c.l.bf16 %v986_v58  ;;  %v991_v59 = vld [vmem:[%s1190_s28 + $0x80] sm:$0xff]  }
  0x39   : > { %v645_v8 = vpack.c.bf16 %v581_v3, %v581_v3  ;;  %v582_v9 = vsel %vm454_vm4, %v390_v52, %v518_v62  ;;  %vm455_vm5 = vcmp.gt.f32.partialorder %v391_v63, 0.0  ;;  %v519_v10 = vmul.f32 0.1, %v391_v63 }
  0x3a   : > { %709 = vst.msk [vmem:[%s1228_s8 + $0x40] sm:$0xf] %vm692_vm0, %v644_v2  ;;  %v646_v11 = vpack.c.bf16 %v582_v9, %v582_v9  ;;  %v324_v12 = vmul.f32 %v1195_v0, %v890_v1  ;;  %v325_v13 = vmul.f32 %v1195_v0, %v891_v4  ;;  %v326_v14 = vmul.f32 %v1195_v0, %v894_v6 }
  0x3b   : > { %710 = vst.msk [vmem:[%s1228_s8 + $0x44] sm:$0xf] %vm692_vm0, %v645_v8  ;;  %v583_v16 = vsel %vm455_vm5, %v391_v63, %v519_v10  ;;  %v895_v17 = vunpack.c.h.bf16 %v986_v58  ;;  %v898_v18 = vunpack.c.l.bf16 %v987_v7  ;;  %v899_v19 = vunpack.c.h.bf16 %v987_v7 }
  0x3c   : > { %711 = vst.msk [vmem:[%s1228_s8 + $0x48] sm:$0xf] %vm692_vm0, %v646_v11  ;;  %v647_v20 = vpack.c.bf16 %v583_v16, %v583_v16  ;;  %v392_v21 = vadd.f32 %v1203_v5, %v324_v12  ;;  %v393_v22 = vadd.f32 %v1203_v5, %v325_v13  ;;  %v394_v23 = vadd.f32 %v1203_v5, %v326_v14 }
  0x3d   : > { %v327_v24 = vmul.f32 %v1195_v0, %v895_v17  ;;  %v328_v25 = vmul.f32 %v1195_v0, %v898_v18  ;;  %v329_v26 = vmul.f32 %v1195_v0, %v899_v19  ;;  %v902_v27 = vunpack.c.l.bf16 %v988_v15  ;;  %v992_v19 = vld [vmem:[%s1190_s28 + $0x88] sm:$0xff]  }
  0x3e   : > { %712 = vst.msk [vmem:[%s1228_s8 + $0x4c] sm:$0xf] %vm692_vm0, %v647_v20  ;;  %vm456_vm6 = vcmp.gt.f32.partialorder %v392_v21, 0.0  ;;  %v520_v28 = vmul.f32 0.1, %v392_v21  ;;  %vm457_vm7 = vcmp.gt.f32.partialorder %v393_v22, 0.0  ;;  %v903_v29 = vunpack.c.h.bf16 %v988_v15 }
  0x3f   : > { %v521_v30 = vmul.f32 0.1, %v393_v22  ;;  %vm458_vm8 = vcmp.gt.f32.partialorder %v394_v23, 0.0  ;;  %v522_v31 = vmul.f32 0.1, %v394_v23  ;;  %v395_v32 = vadd.f32 %v1203_v5, %v327_v24  ;;  %v993_v20 = vld [vmem:[%s1190_s28 + $0x90] sm:$0xff]  }
  0x40   : > { %v584_v33 = vsel %vm456_vm6, %v392_v21, %v520_v28  ;;  %v396_v34 = vadd.f32 %v1203_v5, %v328_v25  ;;  %v397_v35 = vadd.f32 %v1203_v5, %v329_v26  ;;  %v330_v36 = vmul.f32 %v1195_v0, %v902_v27 }
  0x41   : > { %v648_v37 = vpack.c.bf16 %v584_v33, %v584_v33  ;;  %v585_v38 = vsel %vm457_vm7, %v393_v22, %v521_v30  ;;  %v586_v39 = vsel %vm458_vm8, %v394_v23, %v522_v31  ;;  %vm459_vm9 = vcmp.gt.f32.partialorder %v395_v32, 0.0 }
  0x42   : > { %v649_v41 = vpack.c.bf16 %v585_v38, %v585_v38  ;;  %v650_v42 = vpack.c.bf16 %v586_v39, %v586_v39  ;;  %v523_v43 = vmul.f32 0.1, %v395_v32  ;;  %vm460_vm10 = vcmp.gt.f32.partialorder %v396_v34, 0.0 }
  0x43   : > { %713 = vst.msk [vmem:[%s1228_s8 + $0x50] sm:$0xf] %vm692_vm0, %v648_v37  ;;  %v524_v44 = vmul.f32 0.1, %v396_v34  ;;  %vm461_vm11 = vcmp.gt.f32.partialorder %v397_v35, 0.0  ;;  %v398_v45 = vadd.f32 %v1203_v5, %v330_v36  ;;  %v331_v46 = vmul.f32 %v1195_v0, %v903_v29 }
  0x44   : > { %714 = vst.msk [vmem:[%s1228_s8 + $0x54] sm:$0xf] %vm692_vm0, %v649_v41  ;;  %v587_v47 = vsel %vm459_vm9, %v395_v32, %v523_v43  ;;  %v525_v48 = vmul.f32 0.1, %v397_v35  ;;  %v906_v49 = vunpack.c.l.bf16 %v989_v40  ;;  %v907_v50 = vunpack.c.h.bf16 %v989_v40  ;;  %v994_v41 = vld [vmem:[%s1190_s28 + $0x98] sm:$0xff]  }
  0x45   : > { %715 = vst.msk [vmem:[%s1228_s8 + $0x58] sm:$0xf] %vm692_vm0, %v650_v42  ;;  %v651_v52 = vpack.c.bf16 %v587_v47, %v587_v47  ;;  %v588_v53 = vsel %vm460_vm10, %v396_v34, %v524_v44  ;;  %vm462_vm12 = vcmp.gt.f32.partialorder %v398_v45, 0.0  ;;  %v526_v54 = vmul.f32 0.1, %v398_v45 }
  0x46   : > { %v652_v55 = vpack.c.bf16 %v588_v53, %v588_v53  ;;  %v589_v56 = vsel %vm461_vm11, %v397_v35, %v525_v48  ;;  %v399_v57 = vadd.f32 %v1203_v5, %v331_v46  ;;  %v332_v58 = vmul.f32 %v1195_v0, %v906_v49  ;;  %v995_v53 = vld [vmem:[%s1190_s28 + $0xa0] sm:$0xff]  }
  0x47   : > { %716 = vst.msk [vmem:[%s1228_s8 + $0x5c] sm:$0xf] %vm692_vm0, %v651_v52  ;;  %v653_v60 = vpack.c.bf16 %v589_v56, %v589_v56  ;;  %v590_v61 = vsel %vm462_vm12, %v398_v45, %v526_v54  ;;  %v333_v62 = vmul.f32 %v1195_v0, %v907_v50  ;;  %v910_v63 = vunpack.c.l.bf16 %v990_v51 }
  0x48   : > { %717 = vst.msk [vmem:[%s1228_s8 + $0x60] sm:$0xf] %vm692_vm0, %v652_v55  ;;  %v654_v1 = vpack.c.bf16 %v590_v61, %v590_v61  ;;  %vm463_vm13 = vcmp.gt.f32.partialorder %v399_v57, 0.0  ;;  %v527_v2 = vmul.f32 0.1, %v399_v57  ;;  %v400_v3 = vadd.f32 %v1203_v5, %v332_v58 }
  0x49   : > { %718 = vst.msk [vmem:[%s1228_s8 + $0x64] sm:$0xf] %vm692_vm0, %v653_v60  ;;  %v401_v4 = vadd.f32 %v1203_v5, %v333_v62  ;;  %v334_v6 = vmul.f32 %v1195_v0, %v910_v63  ;;  %v911_v7 = vunpack.c.h.bf16 %v990_v51  ;;  %v914_v8 = vunpack.c.l.bf16 %v991_v59 }
  0x4a   : > { %719 = vst.msk [vmem:[%s1228_s8 + $0x68] sm:$0xf] %vm692_vm0, %v654_v1  ;;  %v591_v9 = vsel %vm463_vm13, %v399_v57, %v527_v2  ;;  %vm464_vm14 = vcmp.gt.f32.partialorder %v400_v3, 0.0  ;;  %v528_v10 = vmul.f32 0.1, %v400_v3  ;;  %v915_v11 = vunpack.c.h.bf16 %v991_v59  ;;  %v996_v1 = vld [vmem:[%s1190_s28 + $0xa8] sm:$0xff]  }
  0x4b   : > { %v655_v12 = vpack.c.bf16 %v591_v9, %v591_v9  ;;  %vm465_vm15 = vcmp.gt.f32.partialorder %v401_v4, 0.0  ;;  %v529_v13 = vmul.f32 0.1, %v401_v4  ;;  %v402_v14 = vadd.f32 %v1203_v5, %v334_v6 }
  0x4c   : > { %v592_v15 = vsel %vm464_vm14, %v400_v3, %v528_v10  ;;  %v335_v16 = vmul.f32 %v1195_v0, %v911_v7  ;;  %v336_v17 = vmul.f32 %v1195_v0, %v914_v8  ;;  %v337_v18 = vmul.f32 %v1195_v0, %v915_v11 }
  0x4d   : > { %720 = vst.msk [vmem:[%s1228_s8 + $0x6c] sm:$0xf] %vm692_vm0, %v655_v12  ;;  %v656_v21 = vpack.c.bf16 %v592_v15, %v592_v15  ;;  %v593_v22 = vsel %vm465_vm15, %v401_v4, %v529_v13  ;;  %vm466_vm1 = vcmp.gt.f32.partialorder %v402_v14, 0.0  ;;  %v530_v23 = vmul.f32 0.1, %v402_v14 }
  0x4e   : > { %v657_v24 = vpack.c.bf16 %v593_v22, %v593_v22  ;;  %v403_v25 = vadd.f32 %v1203_v5, %v335_v16  ;;  %v404_v26 = vadd.f32 %v1203_v5, %v336_v17  ;;  %v405_v27 = vadd.f32 %v1203_v5, %v337_v18 }
  0x4f   : > { %721 = vst.msk [vmem:[%s1228_s8 + $0x70] sm:$0xf] %vm692_vm0, %v656_v21  ;;  %v594_v28 = vsel %vm466_vm1, %v402_v14, %v530_v23  ;;  %v918_v29 = vunpack.c.l.bf16 %v992_v19  ;;  %v919_v30 = vunpack.c.h.bf16 %v992_v19  ;;  %v922_v31 = vunpack.c.l.bf16 %v993_v20  ;;  %v997_v14 = vld [vmem:[%s1190_s28 + $0xb0] sm:$0xff]  }
  0x50   : > { %722 = vst.msk [vmem:[%s1228_s8 + $0x74] sm:$0xf] %vm692_vm0, %v657_v24  ;;  %v658_v32 = vpack.c.bf16 %v594_v28, %v594_v28  ;;  %vm467_vm2 = vcmp.gt.f32.partialorder %v403_v25, 0.0  ;;  %v531_v33 = vmul.f32 0.1, %v403_v25  ;;  %vm468_vm3 = vcmp.gt.f32.partialorder %v404_v26, 0.0 }
  0x51   : > { %v532_v34 = vmul.f32 0.1, %v404_v26  ;;  %vm469_vm4 = vcmp.gt.f32.partialorder %v405_v27, 0.0  ;;  %v533_v35 = vmul.f32 0.1, %v405_v27  ;;  %v338_v36 = vmul.f32 %v1195_v0, %v918_v29 }
  0x52   : > { %723 = vst.msk [vmem:[%s1228_s8 + $0x78] sm:$0xf] %vm692_vm0, %v658_v32  ;;  %v595_v37 = vsel %vm467_vm2, %v403_v25, %v531_v33  ;;  %v339_v38 = vmul.f32 %v1195_v0, %v919_v30  ;;  %v340_v39 = vmul.f32 %v1195_v0, %v922_v31  ;;  %v923_v40 = vunpack.c.h.bf16 %v993_v20  ;;  %v998_v25 = vld [vmem:[%s1190_s28 + $0xb8] sm:$0xff]  }
  0x53   : > { %v659_v42 = vpack.c.bf16 %v595_v37, %v595_v37  ;;  %v596_v43 = vsel %vm468_vm3, %v404_v26, %v532_v34  ;;  %v597_v44 = vsel %vm469_vm4, %v405_v27, %v533_v35  ;;  %v406_v45 = vadd.f32 %v1203_v5, %v338_v36 }
  0x54   : > { %v660_v46 = vpack.c.bf16 %v596_v43, %v596_v43  ;;  %v661_v47 = vpack.c.bf16 %v597_v44, %v597_v44  ;;  %v407_v48 = vadd.f32 %v1203_v5, %v339_v38  ;;  %v408_v49 = vadd.f32 %v1203_v5, %v340_v39 }
  0x55   : > { %724 = vst.msk [vmem:[%s1228_s8 + $0x7c] sm:$0xf] %vm692_vm0, %v659_v42  ;;  %vm470_vm5 = vcmp.gt.f32.partialorder %v406_v45, 0.0  ;;  %v534_v50 = vmul.f32 0.1, %v406_v45  ;;  %v341_v51 = vmul.f32 %v1195_v0, %v923_v40  ;;  %v926_v52 = vunpack.c.l.bf16 %v994_v41 }
  0x56   : > { %725 = vst.msk [vmem:[%s1228_s8 + $0x80] sm:$0xf] %vm692_vm0, %v660_v46  ;;  %vm471_vm6 = vcmp.gt.f32.partialorder %v407_v48, 0.0  ;;  %v535_v54 = vmul.f32 0.1, %v407_v48  ;;  %vm472_vm7 = vcmp.gt.f32.partialorder %v408_v49, 0.0  ;;  %v927_v55 = vunpack.c.h.bf16 %v994_v41 }
  0x57   : > { %726 = vst.msk [vmem:[%s1228_s8 + $0x84] sm:$0xf] %vm692_vm0, %v661_v47  ;;  %v598_v56 = vsel %vm470_vm5, %v406_v45, %v534_v50  ;;  %v536_v57 = vmul.f32 0.1, %v408_v49  ;;  %v409_v58 = vadd.f32 %v1203_v5, %v341_v51  ;;  %v342_v59 = vmul.f32 %v1195_v0, %v926_v52  ;;  %v999_v46 = vld [vmem:[%s1190_s28 + $0xc0] sm:$0xff]   ;;  %v1000_v50 = vld [vmem:[%s1190_s28 + $0xc8] sm:$0xff]  }
  0x58   : > { %v662_v60 = vpack.c.bf16 %v598_v56, %v598_v56  ;;  %v599_v61 = vsel %vm471_vm6, %v407_v48, %v535_v54  ;;  %v343_v62 = vmul.f32 %v1195_v0, %v927_v55  ;;  %v930_v63 = vunpack.c.l.bf16 %v995_v53 }
  0x59   : > { %v663_v2 = vpack.c.bf16 %v599_v61, %v599_v61  ;;  %v600_v3 = vsel %vm472_vm7, %v408_v49, %v536_v57  ;;  %vm473_vm8 = vcmp.gt.f32.partialorder %v409_v58, 0.0  ;;  %v537_v4 = vmul.f32 0.1, %v409_v58 }
  0x5a   : > { %727 = vst.msk [vmem:[%s1228_s8 + $0x88] sm:$0xf] %vm692_vm0, %v662_v60  ;;  %v664_v6 = vpack.c.bf16 %v600_v3, %v600_v3  ;;  %v410_v7 = vadd.f32 %v1203_v5, %v342_v59  ;;  %v411_v8 = vadd.f32 %v1203_v5, %v343_v62  ;;  %v344_v9 = vmul.f32 %v1195_v0, %v930_v63  ;;  %v1001_v62 = vld [vmem:[%s1190_s28 + $0xd0] sm:$0xff]  }
  0x5b   : > { %728 = vst.msk [vmem:[%s1228_s8 + $0x8c] sm:$0xf] %vm692_vm0, %v663_v2  ;;  %v601_v10 = vsel %vm473_vm8, %v409_v58, %v537_v4  ;;  %v931_v11 = vunpack.c.h.bf16 %v995_v53  ;;  %v934_v12 = vunpack.c.l.bf16 %v996_v1  ;;  %v935_v13 = vunpack.c.h.bf16 %v996_v1 }
  0x5c   : > { %729 = vst.msk [vmem:[%s1228_s8 + $0x90] sm:$0xf] %vm692_vm0, %v664_v6  ;;  %v665_v15 = vpack.c.bf16 %v601_v10, %v601_v10  ;;  %vm474_vm9 = vcmp.gt.f32.partialorder %v410_v7, 0.0  ;;  %v538_v16 = vmul.f32 0.1, %v410_v7  ;;  %vm475_vm10 = vcmp.gt.f32.partialorder %v411_v8, 0.0 }
  0x5d   : > { %v539_v17 = vmul.f32 0.1, %v411_v8  ;;  %v412_v18 = vadd.f32 %v1203_v5, %v344_v9  ;;  %v345_v19 = vmul.f32 %v1195_v0, %v931_v11  ;;  %v346_v20 = vmul.f32 %v1195_v0, %v934_v12 }
  0x5e   : > { %730 = vst.msk [vmem:[%s1228_s8 + $0x94] sm:$0xf] %vm692_vm0, %v665_v15  ;;  %v602_v21 = vsel %vm474_vm9, %v410_v7, %v538_v16  ;;  %v347_v22 = vmul.f32 %v1195_v0, %v935_v13  ;;  %v938_v23 = vunpack.c.l.bf16 %v997_v14  ;;  %v939_v24 = vunpack.c.h.bf16 %v997_v14 }
  0x5f   : > { %v666_v26 = vpack.c.bf16 %v602_v21, %v602_v21  ;;  %v603_v27 = vsel %vm475_vm10, %v411_v8, %v539_v17  ;;  %vm476_vm11 = vcmp.gt.f32.partialorder %v412_v18, 0.0  ;;  %v540_v28 = vmul.f32 0.1, %v412_v18 }
  0x60   : > { %v667_v29 = vpack.c.bf16 %v603_v27, %v603_v27  ;;  %v413_v30 = vadd.f32 %v1203_v5, %v345_v19  ;;  %v414_v31 = vadd.f32 %v1203_v5, %v346_v20  ;;  %v415_v32 = vadd.f32 %v1203_v5, %v347_v22 }
  0x61   : > { %731 = vst.msk [vmem:[%s1228_s8 + $0x98] sm:$0xf] %vm692_vm0, %v666_v26  ;;  %v604_v33 = vsel %vm476_vm11, %v412_v18, %v540_v28  ;;  %v348_v34 = vmul.f32 %v1195_v0, %v938_v23  ;;  %v349_v35 = vmul.f32 %v1195_v0, %v939_v24  ;;  %v942_v36 = vunpack.c.l.bf16 %v998_v25  ;;  %v1002_v24 = vld [vmem:[%s1190_s28 + $0xd8] sm:$0xff]  }
  0x62   : > { %732 = vst.msk [vmem:[%s1228_s8 + $0x9c] sm:$0xf] %vm692_vm0, %v667_v29  ;;  %v668_v37 = vpack.c.bf16 %v604_v33, %v604_v33  ;;  %vm477_vm12 = vcmp.gt.f32.partialorder %v413_v30, 0.0  ;;  %v541_v38 = vmul.f32 0.1, %v413_v30  ;;  %vm478_vm13 = vcmp.gt.f32.partialorder %v414_v31, 0.0 }
  0x63   : > { %v542_v39 = vmul.f32 0.1, %v414_v31  ;;  %vm479_vm14 = vcmp.gt.f32.partialorder %v415_v32, 0.0  ;;  %v543_v40 = vmul.f32 0.1, %v415_v32  ;;  %v416_v41 = vadd.f32 %v1203_v5, %v348_v34 }
  0x64   : > { %733 = vst.msk [vmem:[%s1228_s8 + $0xa0] sm:$0xf] %vm692_vm0, %v668_v37  ;;  %v605_v42 = vsel %vm477_vm12, %v413_v30, %v541_v38  ;;  %v417_v43 = vadd.f32 %v1203_v5, %v349_v35  ;;  %v350_v44 = vmul.f32 %v1195_v0, %v942_v36  ;;  %v943_v45 = vunpack.c.h.bf16 %v998_v25  ;;  %v1004_v37 = vld [vmem:[%s1190_s28 + $0xe8] sm:$0xff]  }
  0x65   : > { %v669_v47 = vpack.c.bf16 %v605_v42, %v605_v42  ;;  %v606_v48 = vsel %vm478_vm13, %v414_v31, %v542_v39  ;;  %v607_v49 = vsel %vm479_vm14, %v415_v32, %v543_v40  ;;  %vm480_vm15 = vcmp.gt.f32.partialorder %v416_v41, 0.0  ;;  %v1003_v32 = vld [vmem:[%s1190_s28 + $0xe0] sm:$0xff]  }
  0x66   : > { %v670_v51 = vpack.c.bf16 %v606_v48, %v606_v48  ;;  %v671_v52 = vpack.c.bf16 %v607_v49, %v607_v49  ;;  %v544_v53 = vmul.f32 0.1, %v416_v41  ;;  %vm481_vm1 = vcmp.gt.f32.partialorder %v417_v43, 0.0 }
  0x67   : > { %734 = vst.msk [vmem:[%s1228_s8 + $0xa4] sm:$0xf] %vm692_vm0, %v669_v47  ;;  %v545_v54 = vmul.f32 0.1, %v417_v43  ;;  %v418_v55 = vadd.f32 %v1203_v5, %v350_v44  ;;  %v351_v56 = vmul.f32 %v1195_v0, %v943_v45  ;;  %v946_v57 = vunpack.c.l.bf16 %v999_v46 }
  0x68   : > { %735 = vst.msk [vmem:[%s1228_s8 + $0xa8] sm:$0xf] %vm692_vm0, %v670_v51  ;;  %v608_v58 = vsel %vm480_vm15, %v416_v41, %v544_v53  ;;  %v947_v59 = vunpack.c.h.bf16 %v999_v46  ;;  %v950_v60 = vunpack.c.l.bf16 %v1000_v50  ;;  %v951_v61 = vunpack.c.h.bf16 %v1000_v50 }
  0x69   : > { %736 = vst.msk [vmem:[%s1228_s8 + $0xac] sm:$0xf] %vm692_vm0, %v671_v52  ;;  %v672_v63 = vpack.c.bf16 %v608_v58, %v608_v58  ;;  %v609_v1 = vsel %vm481_vm1, %v417_v43, %v545_v54  ;;  %vm482_vm2 = vcmp.gt.f32.partialorder %v418_v55, 0.0  ;;  %v546_v2 = vmul.f32 0.1, %v418_v55 }
  0x6a   : > { %v673_v3 = vpack.c.bf16 %v609_v1, %v609_v1  ;;  %v419_v4 = vadd.f32 %v1203_v5, %v351_v56  ;;  %v352_v6 = vmul.f32 %v1195_v0, %v946_v57  ;;  %v353_v7 = vmul.f32 %v1195_v0, %v947_v59  ;;  %v1005_v56 = vld [vmem:[%s1190_s28 + $0xf0] sm:$0xff]  }
  0x6b   : > { %737 = vst.msk [vmem:[%s1228_s8 + $0xb0] sm:$0xf] %vm692_vm0, %v672_v63  ;;  %v610_v8 = vsel %vm482_vm2, %v418_v55, %v546_v2  ;;  %v354_v9 = vmul.f32 %v1195_v0, %v950_v60  ;;  %v355_v10 = vmul.f32 %v1195_v0, %v951_v61  ;;  %v954_v11 = vunpack.c.l.bf16 %v1001_v62 }
  0x6c   : > { %738 = vst.msk [vmem:[%s1228_s8 + $0xb4] sm:$0xf] %vm692_vm0, %v673_v3  ;;  %v674_v12 = vpack.c.bf16 %v610_v8, %v610_v8  ;;  %vm483_vm3 = vcmp.gt.f32.partialorder %v419_v4, 0.0  ;;  %v547_v13 = vmul.f32 0.1, %v419_v4  ;;  %v420_v14 = vadd.f32 %v1203_v5, %v352_v6 }
  0x6d   : > { %v421_v15 = vadd.f32 %v1203_v5, %v353_v7  ;;  %v422_v16 = vadd.f32 %v1203_v5, %v354_v9  ;;  %v423_v17 = vadd.f32 %v1203_v5, %v355_v10  ;;  %v356_v18 = vmul.f32 %v1195_v0, %v954_v11 }
  0x6e   : > { %739 = vst.msk [vmem:[%s1228_s8 + $0xb8] sm:$0xf] %vm692_vm0, %v674_v12  ;;  %v611_v19 = vsel %vm483_vm3, %v419_v4, %v547_v13  ;;  %vm484_vm4 = vcmp.gt.f32.partialorder %v420_v14, 0.0  ;;  %v548_v20 = vmul.f32 0.1, %v420_v14  ;;  %v955_v21 = vunpack.c.h.bf16 %v1001_v62  ;;  %v1006_v13 = vld [vmem:[%s1190_s28 + $0xf8] sm:$0xff]  }
  0x6f   : > { %v675_v22 = vpack.c.bf16 %v611_v19, %v611_v19  ;;  %vm485_vm5 = vcmp.gt.f32.partialorder %v421_v15, 0.0  ;;  %v549_v23 = vmul.f32 0.1, %v421_v15  ;;  %vm486_vm6 = vcmp.gt.f32.partialorder %v422_v16, 0.0  ;;  %s1066_s28 = sshra.s32 %s773_s26, 4  ;;  %s1067_s28 = int_to_ptr.hbm [resolvable:$true] %s1066_s28 }
  0x70   : > { %v612_v25 = vsel %vm484_vm4, %v420_v14, %v548_v20  ;;  %v550_v26 = vmul.f32 0.1, %v422_v16  ;;  %vm487_vm7 = vcmp.gt.f32.partialorder %v423_v17, 0.0  ;;  %v551_v27 = vmul.f32 0.1, %v423_v17  ;;  %s1068_s29 = scalar_lea.hbm %s1067_s28, 256  ;;  %p1073_p0 = scmp.lt.s32.totalorder %s1067_s28, %s1532_s3 }
  0x71   : > { %740 = vst.msk [vmem:[%s1228_s8 + $0xbc] sm:$0xf] %vm692_vm0, %v675_v22  ;;  %v676_v28 = vpack.c.bf16 %v612_v25, %v612_v25  ;;  %v613_v29 = vsel %vm485_vm5, %v421_v15, %v549_v23  ;;  %v424_v30 = vadd.f32 %v1203_v5, %v356_v18  ;;  %v357_v31 = vmul.f32 %v1195_v0, %v955_v21  ;;  %p1069_p11 = scmp.ne.s32.totalorder %s1067_s28, %s1068_s29  ;;  %p1074_p1 = scmp.lt.s32.totalorder %s1072_s5, %s1068_s29 }
  0x72   : > { %v677_v33 = vpack.c.bf16 %v613_v29, %v613_v29  ;;  %v614_v34 = vsel %vm486_vm6, %v422_v16, %v550_v26  ;;  %v615_v35 = vsel %vm487_vm7, %v423_v17, %v551_v27  ;;  %v958_v36 = vunpack.c.l.bf16 %v1002_v24 }
  0x73   : > { %741 = vst.msk [vmem:[%s1228_s8 + $0xc0] sm:$0xf] %vm692_vm0, %v676_v28  ;;  %v678_v38 = vpack.c.bf16 %v614_v34, %v614_v34  ;;  %v679_v39 = vpack.c.bf16 %v615_v35, %v615_v35  ;;  %vm488_vm8 = vcmp.gt.f32.partialorder %v424_v30, 0.0  ;;  %v552_v40 = vmul.f32 0.1, %v424_v30  ;;  %p1070_p12 = pnand %p1069_p11, %p1176_p5  ;;  %p1075_p2 = por %p1074_p1, %p1073_p0 }
  0x74   : > { %742 = vst.msk [vmem:[%s1228_s8 + $0xc4] sm:$0xf] %vm692_vm0, %v677_v33  ;;  %v425_v41 = vadd.f32 %v1203_v5, %v357_v31  ;;  %v358_v42 = vmul.f32 %v1195_v0, %v958_v36  ;;  %v959_v43 = vunpack.c.h.bf16 %v1002_v24  ;;  %v962_v44 = vunpack.c.l.bf16 %v1003_v32  ;;  %v1051_v33 = vld [vmem:[%s1531_s2] ss:$0 sm:$0xff] }
  0x75   : > { %743 = vst.msk [vmem:[%s1228_s8 + $0xc8] sm:$0xf] %vm692_vm0, %v678_v38  ;;  %v616_v45 = vsel %vm488_vm8, %v424_v30, %v552_v40  ;;  %v963_v46 = vunpack.c.h.bf16 %v1003_v32  ;;  %v966_v47 = vunpack.c.l.bf16 %v1004_v37  ;;  %v967_v48 = vunpack.c.h.bf16 %v1004_v37  ;;  %p1071_p13 = pneg %p1070_p12 }
  0x76   : > { %744 = vst.msk [vmem:[%s1228_s8 + $0xcc] sm:$0xf] %vm692_vm0, %v679_v39  ;;  %v680_v49 = vpack.c.bf16 %v616_v45, %v616_v45  ;;  %vm489_vm9 = vcmp.gt.f32.partialorder %v425_v41, 0.0  ;;  %v553_v50 = vmul.f32 0.1, %v425_v41  ;;  %v426_v51 = vadd.f32 %v1203_v5, %v358_v42 }
  0x77   : > { %v359_v52 = vmul.f32 %v1195_v0, %v959_v43  ;;  %v360_v53 = vmul.f32 %v1195_v0, %v962_v44  ;;  %v361_v54 = vmul.f32 %v1195_v0, %v963_v46  ;;  %v362_v55 = vmul.f32 %v1195_v0, %v966_v47  ;;  %p1076_p3 = pnand %p1075_p2, %p1071_p13 }
  0x78   : > { %745 = vst.msk [vmem:[%s1228_s8 + $0xd0] sm:$0xf] %vm692_vm0, %v680_v49  ;;  %v617_v57 = vsel %vm489_vm9, %v425_v41, %v553_v50  ;;  %vm490_vm10 = vcmp.gt.f32.partialorder %v426_v51, 0.0  ;;  %v554_v58 = vmul.f32 0.1, %v426_v51  ;;  %v363_v59 = vmul.f32 %v1195_v0, %v967_v48 }
  0x79   : > { %v681_v60 = vpack.c.bf16 %v617_v57, %v617_v57  ;;  %v427_v61 = vadd.f32 %v1203_v5, %v359_v52  ;;  %v428_v62 = vadd.f32 %v1203_v5, %v360_v53  ;;  %v429_v63 = vadd.f32 %v1203_v5, %v361_v54 }
  0x7a   : > { %v618_v1 = vsel %vm490_vm10, %v426_v51, %v554_v58  ;;  %v430_v2 = vadd.f32 %v1203_v5, %v362_v55  ;;  %v431_v3 = vadd.f32 %v1203_v5, %v363_v59  ;;  %v970_v4 = vunpack.c.l.bf16 %v1005_v56 }
  0x7b   : > { %746 = vst.msk [vmem:[%s1228_s8 + $0xd4] sm:$0xf] %vm692_vm0, %v681_v60  ;;  %v682_v6 = vpack.c.bf16 %v618_v1, %v618_v1  ;;  %vm491_vm11 = vcmp.gt.f32.partialorder %v427_v61, 0.0  ;;  %v555_v7 = vmul.f32 0.1, %v427_v61  ;;  %vm492_vm12 = vcmp.gt.f32.partialorder %v428_v62, 0.0 }
  0x7c   : > { %v556_v8 = vmul.f32 0.1, %v428_v62  ;;  %vm493_vm13 = vcmp.gt.f32.partialorder %v429_v63, 0.0  ;;  %v557_v9 = vmul.f32 0.1, %v429_v63  ;;  %vm494_vm14 = vcmp.gt.f32.partialorder %v430_v2, 0.0 }
  0x7d   : > { %747 = vst.msk [vmem:[%s1228_s8 + $0xd8] sm:$0xf] %vm692_vm0, %v682_v6  ;;  %v619_v10 = vsel %vm491_vm11, %v427_v61, %v555_v7  ;;  %v558_v11 = vmul.f32 0.1, %v430_v2  ;;  %vm495_vm15 = vcmp.gt.f32.partialorder %v431_v3, 0.0  ;;  %v364_v12 = vmul.f32 %v1195_v0, %v970_v4 }
  0x7e   : > { %v683_v14 = vpack.c.bf16 %v619_v10, %v619_v10  ;;  %v620_v15 = vsel %vm492_vm12, %v428_v62, %v556_v8  ;;  %v621_v16 = vsel %vm493_vm13, %v429_v63, %v557_v9  ;;  %v559_v17 = vmul.f32 0.1, %v431_v3 }
  0x7f   : > { %v684_v18 = vpack.c.bf16 %v620_v15, %v620_v15  ;;  %v685_v19 = vpack.c.bf16 %v621_v16, %v621_v16  ;;  %v622_v20 = vsel %vm494_vm14, %v430_v2, %v558_v11  ;;  %v432_v21 = vadd.f32 %v1203_v5, %v364_v12  ;;  %v1050_v5 = vld [vmem:[%s1530_s1] ss:$0 sm:$0xff] }
  0x80   : > { %748 = vst.msk [vmem:[%s1228_s8 + $0xdc] sm:$0xf] %vm692_vm0, %v683_v14  ;;  %v686_v22 = vpack.c.bf16 %v622_v20, %v622_v20  ;;  %v623_v23 = vsel %vm495_vm15, %v431_v3, %v559_v17  ;;  %v971_v24 = vunpack.c.h.bf16 %v1005_v56  ;;  %v974_v0 = vunpack.c.l.bf16 %v1006_v13 }
  0x81   : > { %749 = vst.msk [vmem:[%s1228_s8 + $0xe0] sm:$0xf] %vm692_vm0, %v684_v18  ;;  %v687_v25 = vpack.c.bf16 %v623_v23, %v623_v23  ;;  %vm496_vm1 = vcmp.gt.f32.partialorder %v432_v21, 0.0  ;;  %v560_v26 = vmul.f32 0.1, %v432_v21  ;;  %v975_v27 = vunpack.c.h.bf16 %v1006_v13 }
  0x82   : > { %750 = vst.msk [vmem:[%s1228_s8 + $0xe4] sm:$0xf] %vm692_vm0, %v685_v19  ;;  %v365_v28 = vmul.f32 %v1050_v5, %v971_v24  ;;  %v366_v29 = vmul.f32 %v1050_v5, %v974_v0 }
  0x83   : > { %751 = vst.msk [vmem:[%s1228_s8 + $0xe8] sm:$0xf] %vm692_vm0, %v686_v22  ;;  %v624_v30 = vsel %vm496_vm1, %v432_v21, %v560_v26  ;;  %v367_v31 = vmul.f32 %v1050_v5, %v975_v27 }
  0x84   : > { %752 = vst.msk [vmem:[%s1228_s8 + $0xec] sm:$0xf] %vm692_vm0, %v687_v25  ;;  %v688_v32 = vpack.c.bf16 %v624_v30, %v624_v30  ;;  %v433_v34 = vadd.f32 %v1051_v33, %v365_v28  ;;  %v434_v35 = vadd.f32 %v1051_v33, %v366_v29 }
  0x85   : > { %v435_v36 = vadd.f32 %v1051_v33, %v367_v31 }
  0x86   : > { %753 = vst.msk [vmem:[%s1228_s8 + $0xf0] sm:$0xf] %vm692_vm0, %v688_v32  ;;  %vm497_vm2 = vcmp.gt.f32.partialorder %v433_v34, 0.0  ;;  %v561_v37 = vmul.f32 0.1, %v433_v34  ;;  %vm498_vm3 = vcmp.gt.f32.partialorder %v434_v35, 0.0 }
  0x87   : > { %v562_v38 = vmul.f32 0.1, %v434_v35  ;;  %vm499_vm4 = vcmp.gt.f32.partialorder %v435_v36, 0.0  ;;  %v563_v39 = vmul.f32 0.1, %v435_v36 }
  0x88   : > { %v625_v40 = vsel %vm497_vm2, %v433_v34, %v561_v37 }
  0x89   : > { %v689_v41 = vpack.c.bf16 %v625_v40, %v625_v40  ;;  %v626_v42 = vsel %vm498_vm3, %v434_v35, %v562_v38  ;;  %v627_v43 = vsel %vm499_vm4, %v435_v36, %v563_v39 }
  0x8a   : > { %v690_v44 = vpack.c.bf16 %v626_v42, %v626_v42  ;;  %v691_v45 = vpack.c.bf16 %v627_v43, %v627_v43 }
  0x8b   : > { %754 = vst.msk [vmem:[%s1228_s8 + $0xf4] sm:$0xf] %vm692_vm0, %v689_v41 }
  0x8c   : > { %755 = vst.msk [vmem:[%s1228_s8 + $0xf8] sm:$0xf] %vm692_vm0, %v690_v44 }
  0x8d   : > { %756 = vst.msk [vmem:[%s1228_s8 + $0xfc] sm:$0xf] %vm692_vm0, %v691_v45 }
  0x8e   : > { %1079 = shalt.err (!%p1076_p3)
}
  0x8f   : > { %s1116_s6 = smov 64   ;;  %s1117_s8 = smov 4  }
  0x90   : > { %1007 = dma.vmem_to_hbm [thread:$0]  (%p1176_p5), %s771_s16, 4096, %s773_s26, %s758_s27, %s1116_s6, %s1116_s6, %s1117_s8  }
  0x91 PF: > { %p1013_p4 = scmp.ge.s32.totalorder %s1114_s15, 2  ;;  %s787_s10 = sand.u32 1, %s1102_s12  }
  0x92   : > { %s788_s11 = scalar_lea.sflag [#allocation3], %s787_s10 }
  0x93   : > { %p1010_p7 = pnand %p1013_p4, %p1180_p6 }
  0x95   : > { %p1011_p8 = pneg %p1010_p7 }
  0x97   : > { %1097 = dma.done.wait (%p1011_p8), %s788_s11, 4096  }
  0x98   : > { %1099 = vsyncadd (%p1011_p8), %s788_s11, 4294963200  ;;  %p13_p9 = scmp.ge.s32.totalorder %s1163_s18, 6   ;;  %s1535_s12 = smov %s1106_s13 }
  0x99   : > { %s1536_s13 = smov %s1110_s14  ;;  %s1537_s14 = smov %s1174_s21 }
  0x9a   : > { %s1538_s15 = smov %s1163_s18  ;;  %15 = sbr.rel (!%p13_p9) target bundleno = 3 (0x3), region = 67 }
  0x9f   :  { %794 = vsyncpa [#allocation3], 1 }
  0xa0   :  { %796 = vsyncpa [#allocation3 + $0x1], 1 }

</bundles_post_ra>
